<compile_context>
chip_gen: v7x
topology: tpu7x:2x2x1
jax: 0.10.0
libtpu: 0.0.40
codegen_flags: <defaults>
</compile_context>

<pallas_src>
import functools

import jax
import jax.numpy as jnp
from jax import lax
from jax.experimental import pallas as pl
from jax.experimental.pallas import tpu as pltpu

BN_EPS = 1e-5


def _round_up(x, m):
    return ((x + m - 1) // m) * m


# ---------------------------------------------------------------------------
# Pass 1: conv matmul + per-channel sum / sum-of-squares accumulation.
# Grid: (num_m_tiles,) -- reduction axis ("arbitrary"); stats block resident.
# ---------------------------------------------------------------------------
def _stats_kernel(patches_ref, w_ref, stats_ref):
    @pl.when(pl.program_id(0) == 0)
    def _():
        stats_ref[...] = jnp.zeros_like(stats_ref)

    y = jnp.dot(patches_ref[...], w_ref[...],
                preferred_element_type=jnp.float32)           # [TM, C2] f32
    s = jnp.sum(y, axis=0, keepdims=True)                     # [1, C2]
    sq = jnp.sum(y * y, axis=0, keepdims=True)                # [1, C2]
    pad = jnp.zeros((stats_ref.shape[0] - 2, y.shape[1]), jnp.float32)
    stats_ref[...] += jnp.concatenate([s, sq, pad], axis=0)


# ---------------------------------------------------------------------------
# Pass 2: recompute conv tile, apply folded BN affine, ReLU, residual, ReLU.
# Grid: (num_m_tiles,) -- fully parallel over M.
# ---------------------------------------------------------------------------
def _apply_kernel(patches_ref, w_ref, aff_ref, out_ref, *,
                  has_proj, cpad, cin, sc_off):
    y = jnp.dot(patches_ref[...], w_ref[...],
                preferred_element_type=jnp.float32)           # [TM, C2] f32
    aff = aff_ref[...]
    scale = aff[0:1, :]
    shift = aff[1:2, :]
    yhat = y * scale + shift                                  # BN folded (f32)
    if has_proj:
        y1 = jnp.maximum(yhat[:, :cpad], 0.0)                 # conv-BN-ReLU
        y2 = yhat[:, cpad:]                                   # 1x1 conv-BN
        out_ref[...] = jnp.maximum(y1 + y2, 0.0)
    else:
        y1 = jnp.maximum(yhat, 0.0)
        # identity residual == (pad,pad)-tap columns of the patches tile
        res = patches_ref[:, sc_off:sc_off + cin].astype(jnp.float32)
        if cpad > cin:
            res = jnp.concatenate(
                [res, jnp.zeros((res.shape[0], cpad - cin), jnp.float32)],
                axis=1)
        out_ref[...] = jnp.maximum(y1 + res, 0.0)


def _im2col_nhwc(x_nhwc, k, stride, padding):
    """x_nhwc: [N,H,W,Cin] -> patches [N*Hout*Wout, k*k*Cin] ordered (kh,kw,cin)."""
    n, h, w, cin = x_nhwc.shape
    xp = jnp.pad(x_nhwc, ((0, 0), (padding, padding), (padding, padding), (0, 0)))
    hout = (h + 2 * padding - k) // stride + 1
    wout = (w + 2 * padding - k) // stride + 1
    cols = []
    for di in range(k):
        for dj in range(k):
            cols.append(xp[:, di:di + stride * hout:stride,
                            dj:dj + stride * wout:stride, :])
    patches = jnp.concatenate(cols, axis=-1)                  # [N,Hout,Wout,k*k*Cin]
    return patches.reshape(n * hout * wout, k * k * cin), hout, wout


def residual_block_forward(x_nchw, params, *, stride=1, kernel_size=3, padding=1):
    """Pallas forward of ResidualBlock. x_nchw: [N, Cin, H, W] float32."""
    n, cin, h, w = x_nchw.shape
    w_main = params["w_main"].astype(jnp.float32)             # [Cout, Cin, k, k]
    cout = w_main.shape[0]
    k = kernel_size
    has_proj = (stride != 1) or (cin != cout)

    # Shortcut / identity pixels live at the (pad,pad) tap of the patches.
    assert 0 <= padding <= k - 1, "fused shortcut needs padding <= kernel_size-1"
    sc_off = (padding * k + padding) * cin

    # --- im2col in NHWC / bf16 (channels & taps on the lane axis) -----------
    # TODO(synk): build im2col per-tile inside the kernel (manual halo DMA from
    # a padded NHWC input) to avoid materializing the kxk-expanded patches in HBM.
    x_nhwc = jnp.transpose(x_nchw, (0, 2, 3, 1)).astype(jnp.bfloat16)
    patches, hout, wout = _im2col_nhwc(x_nhwc, k, stride, padding)
    m = n * hout * wout
    kk = k * k * cin

    # --- padded, lane-dense geometry -----------------------------------------
    cpad = _round_up(cout, 128)              # lane-dense output channels
    c2 = 2 * cpad if has_proj else cpad      # both branches from one matmul
    k_pad = _round_up(kk, 8)                 # sublane-aligned contraction dim
    tm = 512 if m >= 512 else _round_up(m, 8)
    m_pad = _round_up(m, tm)
    mt = m_pad // tm

    # Zero row/col padding: padded rows contribute 0 to sum and sumsq.
    patches = jnp.pad(patches, ((0, m_pad - m), (0, k_pad - kk)))

    # --- combined weight [K_pad, C2]: main conv + embedded 1x1 shortcut ------
    w1 = jnp.transpose(w_main, (2, 3, 1, 0)).reshape(kk, cout)
    w_comb = jnp.zeros((k_pad, c2), jnp.float32).at[:kk, :cout].set(w1)
    gamma = jnp.zeros((c2,), jnp.float32).at[:cout].set(
        params["gamma1"].astype(jnp.float32))
    beta = jnp.zeros((c2,), jnp.float32).at[:cout].set(
        params["beta1"].astype(jnp.float32))
    if has_proj:
        w2 = jnp.transpose(params["w_sc"].astype(jnp.float32),
                           (2, 3, 1, 0)).reshape(cin, cout)
        w_comb = w_comb.at[sc_off:sc_off + cin, cpad:cpad + cout].set(w2)
        gamma = gamma.at[cpad:cpad + cout].set(params["gamma2"].astype(jnp.float32))
        beta = beta.at[cpad:cpad + cout].set(params["beta2"].astype(jnp.float32))
    w_comb = w_comb.astype(jnp.bfloat16)

    resident = lambda i: (0, 0)              # weights / stats stay in VMEM
    row_tile = lambda i: (i, 0)

    # --- pass 1: batch statistics --------------------------------------------
    stats = pl.pallas_call(
        _stats_kernel,
        out_shape=jax.ShapeDtypeStruct((8, c2), jnp.float32),
        grid_spec=pltpu.PrefetchScalarGridSpec(
            num_scalar_prefetch=0,
            grid=(mt,),
            in_specs=[pl.BlockSpec((tm, k_pad), row_tile),
                      pl.BlockSpec((k_pad, c2), resident)],
            out_specs=pl.BlockSpec((8, c2), resident)),
        compiler_params=pltpu.CompilerParams(
            dimension_semantics=("arbitrary",)),
    )(patches, w_comb)

    # --- fold BN into one per-channel affine (tiny XLA ops) ------------------
    mu = stats[0:1, :] / m
    var = jnp.maximum(stats[1:2, :] / m - mu * mu, 0.0)       # biased batch var
    scale = gamma[None, :] * lax.rsqrt(var + BN_EPS)
    shift = beta[None, :] - mu * scale
    affine = (jnp.zeros((8, c2), jnp.float32)
              .at[0:1, :].set(scale)
              .at[1:2, :].set(shift))

    # --- pass 2: normalize + ReLU + residual add + ReLU ----------------------
    kernel2 = functools.partial(_apply_kernel, has_proj=has_proj,
                                cpad=cpad, cin=cin, sc_off=sc_off)
    out_flat = pl.pallas_call(
        kernel2,
        out_shape=jax.ShapeDtypeStruct((m_pad, cpad), jnp.float32),
        grid_spec=pltpu.PrefetchScalarGridSpec(
            num_scalar_prefetch=0,
            grid=(mt,),
            in_specs=[pl.BlockSpec((tm, k_pad), row_tile),
                      pl.BlockSpec((k_pad, c2), resident),
                      pl.BlockSpec((8, c2), resident)],
            out_specs=pl.BlockSpec((tm, cpad), row_tile)),
        compiler_params=pltpu.CompilerParams(
            dimension_semantics=("parallel",)),
    )(patches, w_comb, affine)

    out_nhwc = out_flat[:m, :cout].reshape(n, hout, wout, cout)
    return jnp.transpose(out_nhwc, (0, 3, 1, 2))              # back to NCHW


def reference_forward(x_nchw, params, *, stride=1, kernel_size=3, padding=1):
    """Pure-JAX (XLA) reference with identical semantics, for verification."""
    cin = x_nchw.shape[1]
    cout = params["w_main"].shape[0]

    def bn(y, gamma, beta):
        mu = jnp.mean(y, axis=(0, 2, 3), keepdims=True)
        var = jnp.mean((y - mu) ** 2, axis=(0, 2, 3), keepdims=True)
        return (y - mu) * lax.rsqrt(var + BN_EPS) * gamma.reshape(1, -1, 1, 1) \
            + beta.reshape(1, -1, 1, 1)

    y = lax.conv_general_dilated(
        x_nchw, params["w_main"], (stride, stride),
        [(padding, padding), (padding, padding)],
        dimension_numbers=("NCHW", "OIHW", "NCHW"))
    y = jnp.maximum(bn(y, params["gamma1"], params["beta1"]), 0.0)
    if stride != 1 or cin != cout:
        s = lax.conv_general_dilated(
            x_nchw, params["w_sc"], (stride, stride), [(0, 0), (0, 0)],
            dimension_numbers=("NCHW", "OIHW", "NCHW"))
        s = bn(s, params["gamma2"], params["beta2"])
    else:
        s = x_nchw
    return jnp.maximum(y + s, 0.0)


def make_params(key, in_ch, out_ch, kernel_size):
    k1, k2 = jax.random.split(key)
    return {
        "w_main": 0.1 * jax.random.normal(
            k1, (out_ch, in_ch, kernel_size, kernel_size), jnp.float32),
        "gamma1": jnp.linspace(0.5, 1.5, out_ch, dtype=jnp.float32),
        "beta1": jnp.linspace(-0.2, 0.2, out_ch, dtype=jnp.float32),
        "w_sc": 0.1 * jax.random.normal(k2, (out_ch, in_ch, 1, 1), jnp.float32),
        "gamma2": jnp.linspace(1.2, 0.8, out_ch, dtype=jnp.float32),
        "beta2": jnp.linspace(0.1, -0.1, out_ch, dtype=jnp.float32),
    }


if __name__ == "__main__":
    key = jax.random.PRNGKey(0)

    configs = [
        dict(n=2, cin=4, cout=8, h=16, w=16, stride=1),   # projection (cin!=cout)
        dict(n=2, cin=4, cout=8, h=16, w=16, stride=2),   # projection + stride
        dict(n=2, cin=8, cout=8, h=16, w=16, stride=1),   # identity shortcut
    ]
    for cfg in configs:
        key, kx, kp = jax.random.split(key, 3)
        x = jax.random.normal(
            kx, (cfg["n"], cfg["cin"], cfg["h"], cfg["w"]), jnp.float32)
        params = make_params(kp, cfg["cin"], cfg["cout"], 3)

        fwd = jax.jit(functools.partial(
            residual_block_forward, stride=cfg["stride"],
            kernel_size=3, padding=1))
        out = jax.block_until_ready(fwd(x, params))

        ref = reference_forward(x, params, stride=cfg["stride"],
                                kernel_size=3, padding=1)
        assert out.shape == ref.shape, (out.shape, ref.shape)
        max_err = float(jnp.max(jnp.abs(out - ref)))
        # bf16 matmul inputs with f32 accumulation -> slightly looser tolerance.
        assert jnp.allclose(out, ref, atol=3e-2, rtol=3e-2), (cfg, max_err)

    print("KERNEL_OK")
</pallas_src>

<mosaic_0001>
module attributes {stable_mosaic.version = 11 : i64} {
  func.func @_stats_kernel(%arg0: i32, %arg1: memref<512x40xbf16, #tpu.memory_space<vmem>>, %arg2: memref<40x256xbf16, #tpu.memory_space<vmem>>, %arg3: memref<8x256xf32, #tpu.memory_space<vmem>>) attributes {dimension_semantics = [#tpu.dimension_semantics<arbitrary>], iteration_bounds = array<i64: 1>, scalar_prefetch = 0 : i64, scratch_operands = 0 : i64, tpu.core_type = #tpu.core_type<tc>, window_params = [{transform_indices = @transform_0, window_bounds = array<i64: 512, 40>}, {pipeline_mode = #tpu.pipeline_mode<synchronous>, transform_indices = @transform_1, window_bounds = array<i64: 40, 256>}, {pipeline_mode = #tpu.pipeline_mode<synchronous>, transform_indices = @transform_2, window_bounds = array<i64: 8, 256>}]} {
    %c0_i32 = arith.constant 0 : i32
    %0 = arith.cmpi eq, %arg0, %c0_i32 : i32
    %1 = arith.extui %0 : i1 to i32
    %c0_i32_0 = arith.constant 0 : i32
    %2 = arith.cmpi ne, %1, %c0_i32_0 : i32
    scf.if %2 {
      %cst_11 = arith.constant 0.000000e+00 : f32
      %16 = vector.broadcast %cst_11 : f32 to vector<8x256xf32>
      %c0_12 = arith.constant 0 : index
      %c0_13 = arith.constant 0 : index
      %17 = vector.load %arg3[%c0_12, %c0_13] : memref<8x256xf32, #tpu.memory_space<vmem>>, vector<8x256xf32>
      tpu.vector_store %arg3[%c0_12, %c0_13], %16 {strides = array<i32>} : memref<8x256xf32, #tpu.memory_space<vmem>>, vector<8x256xf32>,
    } else {
    }
    %c0 = arith.constant 0 : index
    %c0_1 = arith.constant 0 : index
    %3 = vector.load %arg1[%c0, %c0_1] : memref<512x40xbf16, #tpu.memory_space<vmem>>, vector<512x40xbf16>
    %c0_2 = arith.constant 0 : index
    %c0_3 = arith.constant 0 : index
    %4 = vector.load %arg2[%c0_2, %c0_3] : memref<40x256xbf16, #tpu.memory_space<vmem>>, vector<40x256xbf16>
    %cst = arith.constant dense<0.000000e+00> : vector<512x256xf32>
    %5 = tpu.matmul %3, %4, %cst {dimension_numbers = #tpu.dot_dimension_numbers<[1], [0], [0], [1], [0, 0, 1, 1], [], []>} : vector<512x40xbf16>, vector<40x256xbf16>, vector<512x256xf32> -> vector<512x256xf32>
    %cst_4 = arith.constant dense<0.000000e+00> : vector<256xf32>
    %6 = vector.multi_reduction <add>, %5, %cst_4 [0] : vector<512x256xf32> to vector<256xf32>
    %7 = vector.shape_cast %6 : vector<256xf32> to vector<1x256xf32>
    %8 = arith.mulf %5, %5 : vector<512x256xf32>
    %cst_5 = arith.constant dense<0.000000e+00> : vector<256xf32>
    %9 = vector.multi_reduction <add>, %8, %cst_5 [0] : vector<512x256xf32> to vector<256xf32>
    %10 = vector.shape_cast %9 : vector<256xf32> to vector<1x256xf32>
    %cst_6 = arith.constant 0.000000e+00 : f32
    %11 = vector.broadcast %cst_6 : f32 to vector<6x256xf32>
    %c0_7 = arith.constant 0 : index
    %c0_8 = arith.constant 0 : index
    %12 = vector.load %arg3[%c0_7, %c0_8] : memref<8x256xf32, #tpu.memory_space<vmem>>, vector<8x256xf32>
    %13 = tpu.concatenate %7, %10, %11 in 0 : vector<1x256xf32>, vector<1x256xf32>, vector<6x256xf32> -> vector<8x256xf32>
    %14 = arith.addf %12, %13 : vector<8x256xf32>
    %c0_9 = arith.constant 0 : index
    %c0_10 = arith.constant 0 : index
    %15 = vector.load %arg3[%c0_9, %c0_10] : memref<8x256xf32, #tpu.memory_space<vmem>>, vector<8x256xf32>
    tpu.vector_store %arg3[%c0_9, %c0_10], %14 {strides = array<i32>} : memref<8x256xf32, #tpu.memory_space<vmem>>, vector<8x256xf32>,
    return
  }
  func.func @transform_0(%arg0: i32) -> (i32, i32) {
    %c0_i32 = arith.constant 0 : i32
    %c0_i32_0 = arith.constant 0 : i32
    return %arg0, %c0_i32 : i32, i32
  }
  func.func @transform_1(%arg0: i32) -> (i32, i32) {
    %c0_i32 = arith.constant 0 : i32
    %c0_i32_0 = arith.constant 0 : i32
    %c0_i32_1 = arith.constant 0 : i32
    return %c0_i32, %c0_i32_0 : i32, i32
  }
  func.func @transform_2(%arg0: i32) -> (i32, i32) {
    %c0_i32 = arith.constant 0 : i32
    %c0_i32_0 = arith.constant 0 : i32
    %c0_i32_1 = arith.constant 0 : i32
    return %c0_i32, %c0_i32_0 : i32, i32
  }
}

module attributes {stable_mosaic.version = 11 : i64} {
  func.func @_apply_kernel(%arg0: i32, %arg1: memref<512x40xbf16, #tpu.memory_space<vmem>>, %arg2: memref<40x256xbf16, #tpu.memory_space<vmem>>, %arg3: memref<8x256xf32, #tpu.memory_space<vmem>>, %arg4: memref<512x128xf32, #tpu.memory_space<vmem>>) attributes {dimension_semantics = [#tpu.dimension_semantics<parallel>], iteration_bounds = array<i64: 1>, scalar_prefetch = 0 : i64, scratch_operands = 0 : i64, tpu.core_type = #tpu.core_type<tc>, window_params = [{transform_indices = @transform_0, window_bounds = array<i64: 512, 40>}, {pipeline_mode = #tpu.pipeline_mode<synchronous>, transform_indices = @transform_1, window_bounds = array<i64: 40, 256>}, {pipeline_mode = #tpu.pipeline_mode<synchronous>, transform_indices = @transform_2, window_bounds = array<i64: 8, 256>}, {transform_indices = @transform_3, window_bounds = array<i64: 512, 128>}]} {
    %c0 = arith.constant 0 : index
    %c0_0 = arith.constant 0 : index
    %0 = vector.load %arg1[%c0, %c0_0] : memref<512x40xbf16, #tpu.memory_space<vmem>>, vector<512x40xbf16>
    %c0_1 = arith.constant 0 : index
    %c0_2 = arith.constant 0 : index
    %1 = vector.load %arg2[%c0_1, %c0_2] : memref<40x256xbf16, #tpu.memory_space<vmem>>, vector<40x256xbf16>
    %cst = arith.constant dense<0.000000e+00> : vector<512x256xf32>
    %2 = tpu.matmul %0, %1, %cst {dimension_numbers = #tpu.dot_dimension_numbers<[1], [0], [0], [1], [0, 0, 1, 1], [], []>} : vector<512x40xbf16>, vector<40x256xbf16>, vector<512x256xf32> -> vector<512x256xf32>
    %c0_3 = arith.constant 0 : index
    %c0_4 = arith.constant 0 : index
    %3 = vector.load %arg3[%c0_3, %c0_4] : memref<8x256xf32, #tpu.memory_space<vmem>>, vector<8x256xf32>
    %4 = vector.extract_strided_slice %3 {offsets = [0, 0], sizes = [1, 256], strides = [1, 1]} : vector<8x256xf32> to vector<1x256xf32>
    %5 = vector.extract_strided_slice %3 {offsets = [1, 0], sizes = [1, 256], strides = [1, 1]} : vector<8x256xf32> to vector<1x256xf32>
    %6 = vector.broadcast %4 : vector<1x256xf32> to vector<512x256xf32>
    %7 = arith.mulf %2, %6 : vector<512x256xf32>
    %8 = vector.broadcast %5 : vector<1x256xf32> to vector<512x256xf32>
    %9 = arith.addf %7, %8 : vector<512x256xf32>
    %10 = vector.extract_strided_slice %9 {offsets = [0, 0], sizes = [512, 128], strides = [1, 1]} : vector<512x256xf32> to vector<512x128xf32>
    %cst_5 = arith.constant 0.000000e+00 : f32
    %11 = vector.broadcast %cst_5 : f32 to vector<512x128xf32>
    %12 = arith.maximumf %10, %11 : vector<512x128xf32>
    %13 = vector.extract_strided_slice %9 {offsets = [0, 128], sizes = [512, 128], strides = [1, 1]} : vector<512x256xf32> to vector<512x128xf32>
    %14 = arith.addf %12, %13 : vector<512x128xf32>
    %cst_6 = arith.constant 0.000000e+00 : f32
    %15 = vector.broadcast %cst_6 : f32 to vector<512x128xf32>
    %16 = arith.maximumf %14, %15 : vector<512x128xf32>
    %c0_7 = arith.constant 0 : index
    %c0_8 = arith.constant 0 : index
    %17 = vector.load %arg4[%c0_7, %c0_8] : memref<512x128xf32, #tpu.memory_space<vmem>>, vector<512x128xf32>
    tpu.vector_store %arg4[%c0_7, %c0_8], %16 {strides = array<i32>} : memref<512x128xf32, #tpu.memory_space<vmem>>, vector<512x128xf32>,
    return
  }
  func.func @transform_0(%arg0: i32) -> (i32, i32) {
    %c0_i32 = arith.constant 0 : i32
    %c0_i32_0 = arith.constant 0 : i32
    return %arg0, %c0_i32 : i32, i32
  }
  func.func @transform_1(%arg0: i32) -> (i32, i32) {
    %c0_i32 = arith.constant 0 : i32
    %c0_i32_0 = arith.constant 0 : i32
    %c0_i32_1 = arith.constant 0 : i32
    return %c0_i32, %c0_i32_0 : i32, i32
  }
  func.func @transform_2(%arg0: i32) -> (i32, i32) {
    %c0_i32 = arith.constant 0 : i32
    %c0_i32_0 = arith.constant 0 : i32
    %c0_i32_1 = arith.constant 0 : i32
    return %c0_i32, %c0_i32_0 : i32, i32
  }
  func.func @transform_3(%arg0: i32) -> (i32, i32) {
    %c0_i32 = arith.constant 0 : i32
    %c0_i32_0 = arith.constant 0 : i32
    return %arg0, %c0_i32 : i32, i32
  }
}

</mosaic_0001>

<bundles_post_ra>
// kernel: residual_block_forward.2
= control target key start
LH: loop header
LB: loop body
LE: loop exit
PB: predicated region body
PF: predicated region fallthrough
CT: control target
= control target key end

     0   :  { %v1268_v1 = vmov 0   ;;  %vm369_vm0 = vcmask 1043456   ;;  %vm272_vm1 = vcmask 326656   ;;  %vm1135_vm2 = vcmask 1040384   ;;  %s1785_s1 = inlined_call_operand.vmem [shape: bf16[40,256], index: 1, kind: input, shape index: {}]   ;;  %s1786_s0 = inlined_call_operand.vmem [shape: bf16[512,40], index: 0, kind: input, shape index: {}]   ;;  %s1787_s2 = inlined_call_operand.vmem [shape: f32[8,256], index: 2, kind: output, shape index: {}]  }
   0x1   :  { %v1228_v0 = vld [vmem:[%s1785_s1 + $0x4] ss:$8 sps:$4 sm:$0xff]   ;;  %408 = vmatprep.mubr.bf16.mxu0 %v1268_v1  ;;  %568 = vmatprep.mubr.bf16.mxu1 %v1268_v1  ;;  %v1230_v2 = vld [vmem:[%s1785_s1] ss:$8 sps:$4 sm:$0xff]   ;;  %v1231_v3 = vld [vmem:[%s1785_s1 + $0x14] ss:$8 sps:$4 sm:$0xff]  }
   0x2   :  { %376 = vmatprep.subr.bf16.mxu0 %v1228_v0  ;;  %v86_v4 = vld [vmem:[%s1785_s1 + $0x20] sm:$0xff]  ;;  %1220 = vmatprep.subr.bf16.mxu1 %v1228_v0  ;;  %v1233_v5 = vld [vmem:[%s1785_s1 + $0x10] ss:$8 sps:$4 sm:$0xff]   ;;  %v1237_v11 = vld [vmem:[%s1786_s0 + $0x8] sm:$0xff]   ;;  %vm1138_vm3 = vcmask 1041408  }
   0x3   :  { %377 = vmatpush1.bf16.msra.mxu0 %v1230_v2  ;;  %1223 = vmatpush1.bf16.msra.mxu1 %v1230_v2  ;;  %v1186_v6 = vcombine.high %v86_v4, %v86_v4  ;;  %v1185_v7 = vcombine.low %v86_v4, %v86_v4  ;;  %v1236_v9 = vld [vmem:[%s1786_s0] sm:$0xff]   ;;  %v1246_v12 = vld [vmem:[%s1786_s0 + $0x88] sm:$0xff]   ;;  %v1238_v13 = vld [vmem:[%s1786_s0 + $0x10] sm:$0xff]  }
   0x4   :  { %378 = vmatprep.subr.bf16.mxu0 %v1231_v3  ;;  %1221 = vmatprep.subr.bf16.mxu1 %v1231_v3  ;;  %v1244_v10 = vld [vmem:[%s1786_s0 + $0x80] sm:$0xff]   ;;  %v1248_v14 = vld [vmem:[%s1786_s0 + $0x90] sm:$0xff]   ;;  %v1239_v15 = vld [vmem:[%s1786_s0 + $0x18] sm:$0xff]  }
   0x5   :  { %v371_v8 = vsel %vm369_vm0, %v1185_v7, 0  ;;  %v1250_v16 = vld [vmem:[%s1786_s0 + $0x98] sm:$0xff]   ;;  %v1240_v17 = vld [vmem:[%s1786_s0 + $0x20] sm:$0xff]   ;;  %v1241_v19 = vld [vmem:[%s1786_s0 + $0x28] sm:$0xff]  }
   0x6   :  { %v1252_v18 = vld [vmem:[%s1786_s0 + $0xa0] sm:$0xff]   ;;  %v1254_v20 = vld [vmem:[%s1786_s0 + $0xa8] sm:$0xff]   ;;  %v1242_v21 = vld [vmem:[%s1786_s0 + $0x30] sm:$0xff]  }
   0x7   :  { %379 = vmatpush1.bf16.msra.mxu0 %v1233_v5  ;;  %1224 = vmatpush1.bf16.msra.mxu1 %v1233_v5  ;;  %v1256_v22 = vld [vmem:[%s1786_s0 + $0xb0] sm:$0xff]   ;;  %v1243_v23 = vld [vmem:[%s1786_s0 + $0x38] sm:$0xff]   ;;  %v1245_v25 = vld [vmem:[%s1786_s0 + $0x40] sm:$0xff]  }
   0x8   :  { %1187 = vmatprep.subr.msk.bf16.mxu0 %vm369_vm0, %v1186_v6  ;;  %1222 = vmatprep.subr.msk.bf16.mxu1 %vm369_vm0, %v1186_v6  ;;  %v1258_v24 = vld [vmem:[%s1786_s0 + $0xb8] sm:$0xff]   ;;  %v1260_v26 = vld [vmem:[%s1786_s0 + $0xc0] sm:$0xff]   ;;  %v1247_v27 = vld [vmem:[%s1786_s0 + $0x48] sm:$0xff]  }
   0x9   :  { %v1261_v28 = vld [vmem:[%s1786_s0 + $0xc8] sm:$0xff]   ;;  %v1249_v29 = vld [vmem:[%s1786_s0 + $0x50] sm:$0xff]   ;;  %v1251_v31 = vld [vmem:[%s1786_s0 + $0x58] sm:$0xff]  }
   0xa   :  { %v1262_v30 = vld [vmem:[%s1786_s0 + $0xd0] sm:$0xff]   ;;  %v1263_v32 = vld [vmem:[%s1786_s0 + $0xd8] sm:$0xff]   ;;  %v1253_v33 = vld [vmem:[%s1786_s0 + $0x60] sm:$0xff]  }
   0xb   :  { %381 = vmatpush1.bf16.msra.mxu0 %v371_v8  ;;  %1225 = vmatpush1.bf16.msra.mxu1 %v371_v8  ;;  %v1264_v34 = vld [vmem:[%s1786_s0 + $0xe0] sm:$0xff]   ;;  %v1255_v35 = vld [vmem:[%s1786_s0 + $0x68] sm:$0xff]   ;;  %v1257_v37 = vld [vmem:[%s1786_s0 + $0x70] sm:$0xff]  }
   0xc   :  { %v1265_v36 = vld [vmem:[%s1786_s0 + $0xe8] sm:$0xff]   ;;  %v1266_v38 = vld [vmem:[%s1786_s0 + $0xf0] sm:$0xff]   ;;  %v1259_v39 = vld [vmem:[%s1786_s0 + $0x78] sm:$0xff]  }
   0xd   :  { %v1267_v40 = vld [vmem:[%s1786_s0 + $0xf8] sm:$0xff]  }
   0xe   :  { %1188 = vmatmul.mubr.msk.bf16.vlgmr.msra.gmra.mrb[0].mxu0 %vm272_vm1, %v1236_v9  ;;  %1204 = vmatmul.mubr.msk.bf16.vlgmr.msra.gmra.mrb[0].mxu1 %vm272_vm1, %v1244_v10 }
   0xf   :  { %418 = vmatprep.mubr.bf16.mxu0 %v1268_v1  ;;  %578 = vmatprep.mubr.bf16.mxu1 %v1268_v1 }
  0x16   :  { %1189 = vmatmul.mubr.msk.bf16.gmra.mrb[4].mxu0 %vm272_vm1, %v1237_v11  ;;  %1205 = vmatmul.mubr.msk.bf16.gmra.mrb[4].mxu1 %vm272_vm1, %v1246_v12 }
  0x17   :  { %428 = vmatprep.mubr.bf16.mxu0 %v1268_v1  ;;  %588 = vmatprep.mubr.bf16.mxu1 %v1268_v1 }
  0x1e   :  { %1190 = vmatmul.mubr.msk.bf16.gmra.mrb[8].mxu0 %vm272_vm1, %v1238_v13  ;;  %1206 = vmatmul.mubr.msk.bf16.gmra.mrb[8].mxu1 %vm272_vm1, %v1248_v14 }
  0x1f   :  { %438 = vmatprep.mubr.bf16.mxu0 %v1268_v1  ;;  %598 = vmatprep.mubr.bf16.mxu1 %v1268_v1 }
  0x26   :  { %1191 = vmatmul.mubr.msk.bf16.gmra.mrb[12].mxu0 %vm272_vm1, %v1239_v15  ;;  %1207 = vmatmul.mubr.msk.bf16.gmra.mrb[12].mxu1 %vm272_vm1, %v1250_v16 }
  0x27   :  { %448 = vmatprep.mubr.bf16.mxu0 %v1268_v1  ;;  %608 = vmatprep.mubr.bf16.mxu1 %v1268_v1 }
  0x2e   :  { %1192 = vmatmul.mubr.msk.bf16.gmra.mrb[16].mxu0 %vm272_vm1, %v1240_v17  ;;  %1208 = vmatmul.mubr.msk.bf16.gmra.mrb[16].mxu1 %vm272_vm1, %v1252_v18 }
  0x2f   :  { %458 = vmatprep.mubr.bf16.mxu0 %v1268_v1  ;;  %618 = vmatprep.mubr.bf16.mxu1 %v1268_v1 }
  0x36   :  { %1193 = vmatmul.mubr.msk.bf16.gmra.mrb[20].mxu0 %vm272_vm1, %v1241_v19  ;;  %1209 = vmatmul.mubr.msk.bf16.gmra.mrb[20].mxu1 %vm272_vm1, %v1254_v20 }
  0x37   :  { %468 = vmatprep.mubr.bf16.mxu0 %v1268_v1  ;;  %628 = vmatprep.mubr.bf16.mxu1 %v1268_v1 }
  0x3e   :  { %1194 = vmatmul.mubr.msk.bf16.gmra.mrb[24].mxu0 %vm272_vm1, %v1242_v21  ;;  %1210 = vmatmul.mubr.msk.bf16.gmra.mrb[24].mxu1 %vm272_vm1, %v1256_v22 }
  0x3f   :  { %478 = vmatprep.mubr.bf16.mxu0 %v1268_v1  ;;  %638 = vmatprep.mubr.bf16.mxu1 %v1268_v1 }
  0x46   :  { %1195 = vmatmul.mubr.msk.bf16.gmra.mrb[28].mxu0 %vm272_vm1, %v1243_v23  ;;  %1211 = vmatmul.mubr.msk.bf16.gmra.mrb[28].mxu1 %vm272_vm1, %v1258_v24 }
  0x47   :  { %488 = vmatprep.mubr.bf16.mxu0 %v1268_v1  ;;  %648 = vmatprep.mubr.bf16.mxu1 %v1268_v1 }
  0x4e   :  { %1196 = vmatmul.mubr.msk.bf16.gmra.mrb[32].mxu0 %vm272_vm1, %v1245_v25  ;;  %1212 = vmatmul.mubr.msk.bf16.gmra.mrb[32].mxu1 %vm272_vm1, %v1260_v26 }
  0x4f   :  { %498 = vmatprep.mubr.bf16.mxu0 %v1268_v1  ;;  %658 = vmatprep.mubr.bf16.mxu1 %v1268_v1 }
  0x56   :  { %1197 = vmatmul.mubr.msk.bf16.gmra.mrb[36].mxu0 %vm272_vm1, %v1247_v27  ;;  %1213 = vmatmul.mubr.msk.bf16.gmra.mrb[36].mxu1 %vm272_vm1, %v1261_v28 }
  0x57   :  { %508 = vmatprep.mubr.bf16.mxu0 %v1268_v1  ;;  %668 = vmatprep.mubr.bf16.mxu1 %v1268_v1 }
  0x5e   :  { %1198 = vmatmul.mubr.msk.bf16.gmra.mrb[40].mxu0 %vm272_vm1, %v1249_v29  ;;  %1214 = vmatmul.mubr.msk.bf16.gmra.mrb[40].mxu1 %vm272_vm1, %v1262_v30 }
  0x5f   :  { %518 = vmatprep.mubr.bf16.mxu0 %v1268_v1  ;;  %678 = vmatprep.mubr.bf16.mxu1 %v1268_v1 }
  0x66   :  { %1199 = vmatmul.mubr.msk.bf16.gmra.mrb[44].mxu0 %vm272_vm1, %v1251_v31  ;;  %1215 = vmatmul.mubr.msk.bf16.gmra.mrb[44].mxu1 %vm272_vm1, %v1263_v32 }
  0x67   :  { %528 = vmatprep.mubr.bf16.mxu0 %v1268_v1  ;;  %688 = vmatprep.mubr.bf16.mxu1 %v1268_v1 }
  0x6e   :  { %1200 = vmatmul.mubr.msk.bf16.gmra.mrb[48].mxu0 %vm272_vm1, %v1253_v33  ;;  %1216 = vmatmul.mubr.msk.bf16.gmra.mrb[48].mxu1 %vm272_vm1, %v1264_v34 }
  0x6f   :  { %538 = vmatprep.mubr.bf16.mxu0 %v1268_v1  ;;  %698 = vmatprep.mubr.bf16.mxu1 %v1268_v1 }
  0x76   :  { %1201 = vmatmul.mubr.msk.bf16.gmra.mrb[52].mxu0 %vm272_vm1, %v1255_v35  ;;  %1217 = vmatmul.mubr.msk.bf16.gmra.mrb[52].mxu1 %vm272_vm1, %v1265_v36 }
  0x77   :  { %548 = vmatprep.mubr.bf16.mxu0 %v1268_v1  ;;  %708 = vmatprep.mubr.bf16.mxu1 %v1268_v1 }
  0x7e   :  { %1202 = vmatmul.mubr.msk.bf16.gmra.mrb[56].mxu0 %vm272_vm1, %v1257_v37  ;;  %1218 = vmatmul.mubr.msk.bf16.gmra.mrb[56].mxu1 %vm272_vm1, %v1266_v38 }
  0x7f   :  { %558 = vmatprep.mubr.bf16.mxu0 %v1268_v1  ;;  %718 = vmatprep.mubr.bf16.mxu1 %v1268_v1 }
  0x86   :  { %1203 = vmatmul.mubr.msk.bf16.gmra.mrb[60].mxu0 %vm272_vm1, %v1259_v39  ;;  %1219 = vmatmul.mubr.msk.bf16.gmra.mrb[60].mxu1 %vm272_vm1, %v1267_v40 }
  0xe1   :  { %v410_v41 = vpop.f32.mrb[0].mxu0  ;;  %v1459_v42 = vpop.f32.mrb[0].mxu1 }
  0xe2   :  { %v412_v43 = vpop.f32.mrb[1].mxu0  ;;  %v1461_v44 = vpop.f32.mrb[1].mxu1  ;;  %v867_v47 = vmul.f32 %v410_v41, %v410_v41 }
  0xe3   :  { %v414_v45 = vpop.f32.mrb[2].mxu0  ;;  %v1463_v46 = vpop.f32.mrb[2].mxu1  ;;  %v868_v52 = vmul.f32 %v412_v43, %v412_v43 }
  0xe4   :  { %v729_v48 = vadd.f32 %v414_v45, %v410_v41  ;;  %v869_v49 = vmul.f32 %v414_v45, %v414_v45  ;;  %v416_v50 = vpop.f32.mrb[3].mxu0  ;;  %v1465_v51 = vpop.f32.mrb[3].mxu1 }
  0xe5   :  { %v798_v53 = vadd.f32 %v416_v50, %v412_v43  ;;  %v870_v54 = vmul.f32 %v416_v50, %v416_v50 }
  0xe6   :  { %v995_v55 = vadd.f32 %v869_v49, %v867_v47 }
  0xe7   :  { %v1064_v56 = vadd.f32 %v870_v54, %v868_v52 }
  0xe9   :  { %v420_v57 = vpop.f32.mrb[4].mxu0  ;;  %v1467_v58 = vpop.f32.mrb[4].mxu1 }
  0xea   :  { %v730_v59 = vadd.f32 %v729_v48, %v420_v57  ;;  %v871_v60 = vmul.f32 %v420_v57, %v420_v57  ;;  %v422_v61 = vpop.f32.mrb[5].mxu0  ;;  %v1469_v62 = vpop.f32.mrb[5].mxu1 }
  0xeb   :  { %v799_v63 = vadd.f32 %v798_v53, %v422_v61  ;;  %v872_v0 = vmul.f32 %v422_v61, %v422_v61  ;;  %v424_v1 = vpop.f32.mrb[6].mxu0  ;;  %v1471_v2 = vpop.f32.mrb[6].mxu1 }
  0xec   :  { %v996_v3 = vadd.f32 %v995_v55, %v871_v60  ;;  %v731_v4 = vadd.f32 %v730_v59, %v424_v1  ;;  %v873_v5 = vmul.f32 %v424_v1, %v424_v1  ;;  %v426_v6 = vpop.f32.mrb[7].mxu0  ;;  %v1473_v7 = vpop.f32.mrb[7].mxu1 }
  0xed   :  { %v1065_v8 = vadd.f32 %v1064_v56, %v872_v0  ;;  %v800_v9 = vadd.f32 %v799_v63, %v426_v6  ;;  %v874_v10 = vmul.f32 %v426_v6, %v426_v6 }
  0xee   :  { %v997_v11 = vadd.f32 %v996_v3, %v873_v5 }
  0xef   :  { %v1066_v12 = vadd.f32 %v1065_v8, %v874_v10 }
  0xf1   :  { %v430_v13 = vpop.f32.mrb[8].mxu0  ;;  %v1475_v14 = vpop.f32.mrb[8].mxu1 }
  0xf2   :  { %v732_v15 = vadd.f32 %v731_v4, %v430_v13  ;;  %v875_v16 = vmul.f32 %v430_v13, %v430_v13  ;;  %v432_v17 = vpop.f32.mrb[9].mxu0  ;;  %v1477_v18 = vpop.f32.mrb[9].mxu1 }
  0xf3   :  { %v801_v19 = vadd.f32 %v800_v9, %v432_v17  ;;  %v876_v20 = vmul.f32 %v432_v17, %v432_v17  ;;  %v434_v21 = vpop.f32.mrb[10].mxu0  ;;  %v1479_v22 = vpop.f32.mrb[10].mxu1 }
  0xf4   :  { %v998_v23 = vadd.f32 %v997_v11, %v875_v16  ;;  %v733_v24 = vadd.f32 %v732_v15, %v434_v21  ;;  %v877_v25 = vmul.f32 %v434_v21, %v434_v21  ;;  %v436_v26 = vpop.f32.mrb[11].mxu0  ;;  %v1481_v27 = vpop.f32.mrb[11].mxu1 }
  0xf5   :  { %v1067_v28 = vadd.f32 %v1066_v12, %v876_v20  ;;  %v802_v29 = vadd.f32 %v801_v19, %v436_v26  ;;  %v878_v30 = vmul.f32 %v436_v26, %v436_v26 }
  0xf6   :  { %v999_v31 = vadd.f32 %v998_v23, %v877_v25 }
  0xf7   :  { %v1068_v32 = vadd.f32 %v1067_v28, %v878_v30 }
  0xf9   :  { %v440_v33 = vpop.f32.mrb[12].mxu0  ;;  %v1483_v34 = vpop.f32.mrb[12].mxu1 }
  0xfa   :  { %v734_v35 = vadd.f32 %v733_v24, %v440_v33  ;;  %v879_v36 = vmul.f32 %v440_v33, %v440_v33  ;;  %v442_v37 = vpop.f32.mrb[13].mxu0  ;;  %v1485_v38 = vpop.f32.mrb[13].mxu1 }
  0xfb   :  { %v803_v39 = vadd.f32 %v802_v29, %v442_v37  ;;  %v880_v40 = vmul.f32 %v442_v37, %v442_v37  ;;  %v444_v41 = vpop.f32.mrb[14].mxu0  ;;  %v1487_v43 = vpop.f32.mrb[14].mxu1 }
  0xfc   :  { %v1000_v45 = vadd.f32 %v999_v31, %v879_v36  ;;  %v735_v47 = vadd.f32 %v734_v35, %v444_v41  ;;  %v881_v48 = vmul.f32 %v444_v41, %v444_v41  ;;  %v446_v49 = vpop.f32.mrb[15].mxu0  ;;  %v1489_v50 = vpop.f32.mrb[15].mxu1 }
  0xfd   :  { %v1069_v52 = vadd.f32 %v1068_v32, %v880_v40  ;;  %v804_v53 = vadd.f32 %v803_v39, %v446_v49  ;;  %v882_v54 = vmul.f32 %v446_v49, %v446_v49 }
  0xfe   :  { %v1001_v55 = vadd.f32 %v1000_v45, %v881_v48 }
  0xff   :  { %v1070_v56 = vadd.f32 %v1069_v52, %v882_v54 }
 0x101   :  { %v450_v57 = vpop.f32.mrb[16].mxu0  ;;  %v1491_v59 = vpop.f32.mrb[16].mxu1 }
 0x102   :  { %v736_v60 = vadd.f32 %v735_v47, %v450_v57  ;;  %v883_v61 = vmul.f32 %v450_v57, %v450_v57  ;;  %v452_v63 = vpop.f32.mrb[17].mxu0  ;;  %v1493_v0 = vpop.f32.mrb[17].mxu1 }
 0x103   :  { %v805_v1 = vadd.f32 %v804_v53, %v452_v63  ;;  %v884_v3 = vmul.f32 %v452_v63, %v452_v63  ;;  %v454_v4 = vpop.f32.mrb[18].mxu0  ;;  %v1495_v5 = vpop.f32.mrb[18].mxu1 }
 0x104   :  { %v1002_v6 = vadd.f32 %v1001_v55, %v883_v61  ;;  %v737_v8 = vadd.f32 %v736_v60, %v454_v4  ;;  %v885_v9 = vmul.f32 %v454_v4, %v454_v4  ;;  %v456_v10 = vpop.f32.mrb[19].mxu0  ;;  %v1497_v11 = vpop.f32.mrb[19].mxu1 }
 0x105   :  { %v1071_v12 = vadd.f32 %v1070_v56, %v884_v3  ;;  %v806_v13 = vadd.f32 %v805_v1, %v456_v10  ;;  %v886_v15 = vmul.f32 %v456_v10, %v456_v10 }
 0x106   :  { %v1003_v16 = vadd.f32 %v1002_v6, %v885_v9 }
 0x107   :  { %v1072_v17 = vadd.f32 %v1071_v12, %v886_v15 }
 0x109   :  { %v460_v19 = vpop.f32.mrb[20].mxu0  ;;  %v1499_v20 = vpop.f32.mrb[20].mxu1 }
 0x10a   :  { %v738_v21 = vadd.f32 %v737_v8, %v460_v19  ;;  %v887_v23 = vmul.f32 %v460_v19, %v460_v19  ;;  %v462_v24 = vpop.f32.mrb[21].mxu0  ;;  %v1501_v25 = vpop.f32.mrb[21].mxu1 }
 0x10b   :  { %v807_v26 = vadd.f32 %v806_v13, %v462_v24  ;;  %v888_v28 = vmul.f32 %v462_v24, %v462_v24  ;;  %v464_v29 = vpop.f32.mrb[22].mxu0  ;;  %v1503_v30 = vpop.f32.mrb[22].mxu1 }
 0x10c   :  { %v1004_v31 = vadd.f32 %v1003_v16, %v887_v23  ;;  %v739_v32 = vadd.f32 %v738_v21, %v464_v29  ;;  %v889_v33 = vmul.f32 %v464_v29, %v464_v29  ;;  %v466_v35 = vpop.f32.mrb[23].mxu0  ;;  %v1505_v36 = vpop.f32.mrb[23].mxu1 }
 0x10d   :  { %v1073_v37 = vadd.f32 %v1072_v17, %v888_v28  ;;  %v808_v39 = vadd.f32 %v807_v26, %v466_v35  ;;  %v890_v40 = vmul.f32 %v466_v35, %v466_v35 }
 0x10e   :  { %v1005_v41 = vadd.f32 %v1004_v31, %v889_v33 }
 0x10f   :  { %v1074_v45 = vadd.f32 %v1073_v37, %v890_v40 }
 0x111   :  { %v470_v47 = vpop.f32.mrb[24].mxu0  ;;  %v1507_v48 = vpop.f32.mrb[24].mxu1 }
 0x112   :  { %v740_v49 = vadd.f32 %v739_v32, %v470_v47  ;;  %v891_v52 = vmul.f32 %v470_v47, %v470_v47  ;;  %v472_v53 = vpop.f32.mrb[25].mxu0  ;;  %v1509_v54 = vpop.f32.mrb[25].mxu1 }
 0x113   :  { %v809_v55 = vadd.f32 %v808_v39, %v472_v53  ;;  %v892_v56 = vmul.f32 %v472_v53, %v472_v53  ;;  %v474_v57 = vpop.f32.mrb[26].mxu0  ;;  %v1511_v60 = vpop.f32.mrb[26].mxu1 }
 0x114   :  { %v1006_v61 = vadd.f32 %v1005_v41, %v891_v52  ;;  %v741_v63 = vadd.f32 %v740_v49, %v474_v57  ;;  %v893_v1 = vmul.f32 %v474_v57, %v474_v57  ;;  %v476_v3 = vpop.f32.mrb[27].mxu0  ;;  %v1513_v4 = vpop.f32.mrb[27].mxu1 }
 0x115   :  { %v1075_v6 = vadd.f32 %v1074_v45, %v892_v56  ;;  %v810_v8 = vadd.f32 %v809_v55, %v476_v3  ;;  %v894_v9 = vmul.f32 %v476_v3, %v476_v3 }
 0x116   :  { %v1007_v10 = vadd.f32 %v1006_v61, %v893_v1 }
 0x117   :  { %v1076_v12 = vadd.f32 %v1075_v6, %v894_v9 }
 0x119   :  { %v480_v13 = vpop.f32.mrb[28].mxu0  ;;  %v1515_v15 = vpop.f32.mrb[28].mxu1 }
 0x11a   :  { %v742_v16 = vadd.f32 %v741_v63, %v480_v13  ;;  %v895_v17 = vmul.f32 %v480_v13, %v480_v13  ;;  %v482_v19 = vpop.f32.mrb[29].mxu0  ;;  %v1517_v21 = vpop.f32.mrb[29].mxu1 }
 0x11b   :  { %v811_v23 = vadd.f32 %v810_v8, %v482_v19  ;;  %v896_v24 = vmul.f32 %v482_v19, %v482_v19  ;;  %v484_v26 = vpop.f32.mrb[30].mxu0  ;;  %v1519_v28 = vpop.f32.mrb[30].mxu1 }
 0x11c   :  { %v1008_v29 = vadd.f32 %v1007_v10, %v895_v17  ;;  %v743_v31 = vadd.f32 %v742_v16, %v484_v26  ;;  %v897_v32 = vmul.f32 %v484_v26, %v484_v26  ;;  %v486_v33 = vpop.f32.mrb[31].mxu0  ;;  %v1521_v35 = vpop.f32.mrb[31].mxu1 }
 0x11d   :  { %v1077_v37 = vadd.f32 %v1076_v12, %v896_v24  ;;  %v812_v39 = vadd.f32 %v811_v23, %v486_v33  ;;  %v898_v40 = vmul.f32 %v486_v33, %v486_v33 }
 0x11e   :  { %v1009_v41 = vadd.f32 %v1008_v29, %v897_v32 }
 0x11f   :  { %v1078_v45 = vadd.f32 %v1077_v37, %v898_v40 }
 0x121   :  { %v490_v47 = vpop.f32.mrb[32].mxu0  ;;  %v1523_v49 = vpop.f32.mrb[32].mxu1 }
 0x122   :  { %v744_v52 = vadd.f32 %v743_v31, %v490_v47  ;;  %v899_v53 = vmul.f32 %v490_v47, %v490_v47  ;;  %v492_v55 = vpop.f32.mrb[33].mxu0  ;;  %v1525_v56 = vpop.f32.mrb[33].mxu1 }
 0x123   :  { %v813_v57 = vadd.f32 %v812_v39, %v492_v55  ;;  %v900_v61 = vmul.f32 %v492_v55, %v492_v55  ;;  %v494_v63 = vpop.f32.mrb[34].mxu0  ;;  %v1527_v1 = vpop.f32.mrb[34].mxu1 }
 0x124   :  { %v1010_v3 = vadd.f32 %v1009_v41, %v899_v53  ;;  %v745_v6 = vadd.f32 %v744_v52, %v494_v63  ;;  %v901_v8 = vmul.f32 %v494_v63, %v494_v63  ;;  %v496_v9 = vpop.f32.mrb[35].mxu0  ;;  %v1529_v10 = vpop.f32.mrb[35].mxu1 }
 0x125   :  { %v1079_v12 = vadd.f32 %v1078_v45, %v900_v61  ;;  %v814_v13 = vadd.f32 %v813_v57, %v496_v9  ;;  %v902_v16 = vmul.f32 %v496_v9, %v496_v9 }
 0x126   :  { %v1011_v17 = vadd.f32 %v1010_v3, %v901_v8 }
 0x127   :  { %v1080_v19 = vadd.f32 %v1079_v12, %v902_v16 }
 0x129   :  { %v500_v23 = vpop.f32.mrb[36].mxu0  ;;  %v1531_v24 = vpop.f32.mrb[36].mxu1 }
 0x12a   :  { %v746_v26 = vadd.f32 %v745_v6, %v500_v23  ;;  %v903_v29 = vmul.f32 %v500_v23, %v500_v23  ;;  %v502_v31 = vpop.f32.mrb[37].mxu0  ;;  %v1533_v32 = vpop.f32.mrb[37].mxu1 }
 0x12b   :  { %v815_v33 = vadd.f32 %v814_v13, %v502_v31  ;;  %v904_v37 = vmul.f32 %v502_v31, %v502_v31  ;;  %v504_v39 = vpop.f32.mrb[38].mxu0  ;;  %v1535_v40 = vpop.f32.mrb[38].mxu1 }
 0x12c   :  { %v1012_v41 = vadd.f32 %v1011_v17, %v903_v29  ;;  %v747_v47 = vadd.f32 %v746_v26, %v504_v39  ;;  %v905_v45 = vmul.f32 %v504_v39, %v504_v39  ;;  %v506_v52 = vpop.f32.mrb[39].mxu0  ;;  %v1537_v53 = vpop.f32.mrb[39].mxu1 }
 0x12d   :  { %v1081_v55 = vadd.f32 %v1080_v19, %v904_v37  ;;  %v816_v57 = vadd.f32 %v815_v33, %v506_v52  ;;  %v906_v61 = vmul.f32 %v506_v52, %v506_v52 }
 0x12e   :  { %v1013_v63 = vadd.f32 %v1012_v41, %v905_v45 }
 0x12f   :  { %v1082_v3 = vadd.f32 %v1081_v55, %v906_v61 }
 0x131   :  { %v510_v6 = vpop.f32.mrb[40].mxu0  ;;  %v1539_v8 = vpop.f32.mrb[40].mxu1 }
 0x132   :  { %1808 = vst [vmem:[#allocation2_spill] sm:$0xff] %v1539_v8  ;;  %v748_v9 = vadd.f32 %v747_v47, %v510_v6  ;;  %v907_v12 = vmul.f32 %v510_v6, %v510_v6  ;;  %v512_v13 = vpop.f32.mrb[41].mxu0  ;;  %v1541_v16 = vpop.f32.mrb[41].mxu1 }
 0x133   :  { %1809 = vst [vmem:[#allocation3_spill] sm:$0xff] %v1541_v16  ;;  %v817_v23 = vadd.f32 %v816_v57, %v512_v13  ;;  %v908_v17 = vmul.f32 %v512_v13, %v512_v13  ;;  %v514_v26 = vpop.f32.mrb[42].mxu0  ;;  %v1543_v29 = vpop.f32.mrb[42].mxu1 }
 0x134   :  { %1810 = vst [vmem:[#allocation4_spill] sm:$0xff] %v1543_v29  ;;  %v1014_v31 = vadd.f32 %v1013_v63, %v907_v12  ;;  %v749_v39 = vadd.f32 %v748_v9, %v514_v26  ;;  %v909_v19 = vmul.f32 %v514_v26, %v514_v26  ;;  %v516_v33 = vpop.f32.mrb[43].mxu0  ;;  %v1545_v37 = vpop.f32.mrb[43].mxu1 }
 0x135   :  { %1811 = vst [vmem:[#allocation5_spill] sm:$0xff] %v1545_v37  ;;  %v1083_v41 = vadd.f32 %v1082_v3, %v908_v17  ;;  %v818_v45 = vadd.f32 %v817_v23, %v516_v33  ;;  %v910_v52 = vmul.f32 %v516_v33, %v516_v33 }
 0x136   :  { %v1015_v55 = vadd.f32 %v1014_v31, %v909_v19 }
 0x137   :  { %v1084_v47 = vadd.f32 %v1083_v41, %v910_v52 }
 0x139   :  { %v520_v61 = vpop.f32.mrb[44].mxu0  ;;  %v1547_v6 = vpop.f32.mrb[44].mxu1 }
 0x13a   :  { %1812 = vst [vmem:[#allocation6_spill] sm:$0xff] %v1547_v6  ;;  %v750_v16 = vadd.f32 %v749_v39, %v520_v61  ;;  %v911_v57 = vmul.f32 %v520_v61, %v520_v61  ;;  %v522_v13 = vpop.f32.mrb[45].mxu0  ;;  %v1549_v8 = vpop.f32.mrb[45].mxu1 }
 0x13b   :  { %1813 = vst [vmem:[#allocation7_spill] sm:$0xff] %v1549_v8  ;;  %v819_v29 = vadd.f32 %v818_v45, %v522_v13  ;;  %v912_v63 = vmul.f32 %v522_v13, %v522_v13  ;;  %v524_v9 = vpop.f32.mrb[46].mxu0  ;;  %v1551_v12 = vpop.f32.mrb[46].mxu1 }
 0x13c   :  { %1814 = vst [vmem:[#allocation8_spill] sm:$0xff] %v1551_v12  ;;  %v1016_v26 = vadd.f32 %v1015_v55, %v911_v57  ;;  %v751_v37 = vadd.f32 %v750_v16, %v524_v9  ;;  %v913_v3 = vmul.f32 %v524_v9, %v524_v9  ;;  %v526_v23 = vpop.f32.mrb[47].mxu0  ;;  %v1553_v17 = vpop.f32.mrb[47].mxu1 }
 0x13d   :  { %1815 = vst [vmem:[#allocation9_spill] sm:$0xff] %v1553_v17  ;;  %v1085_v31 = vadd.f32 %v1084_v47, %v912_v63  ;;  %v820_v19 = vadd.f32 %v819_v29, %v526_v23  ;;  %v914_v33 = vmul.f32 %v526_v23, %v526_v23 }
 0x13e   :  { %v1017_v41 = vadd.f32 %v1016_v26, %v913_v3 }
 0x13f   :  { %v1086_v39 = vadd.f32 %v1085_v31, %v914_v33 }
 0x141   :  { %v530_v52 = vpop.f32.mrb[48].mxu0  ;;  %v1555_v61 = vpop.f32.mrb[48].mxu1 }
 0x142   :  { %1816 = vst [vmem:[#allocation10_spill] sm:$0xff] %v1555_v61  ;;  %v752_v8 = vadd.f32 %v751_v37, %v530_v52  ;;  %v915_v45 = vmul.f32 %v530_v52, %v530_v52  ;;  %v532_v13 = vpop.f32.mrb[49].mxu0  ;;  %v1557_v6 = vpop.f32.mrb[49].mxu1 }
 0x143   :  { %1817 = vst [vmem:[#allocation11_spill] sm:$0xff] %v1557_v6  ;;  %v821_v12 = vadd.f32 %v820_v19, %v532_v13  ;;  %v916_v55 = vmul.f32 %v532_v13, %v532_v13  ;;  %v534_v16 = vpop.f32.mrb[50].mxu0  ;;  %v1559_v57 = vpop.f32.mrb[50].mxu1 }
 0x144   :  { %1818 = vst [vmem:[#allocation12_spill] sm:$0xff] %v1559_v57  ;;  %v1018_v9 = vadd.f32 %v1017_v41, %v915_v45  ;;  %v753_v17 = vadd.f32 %v752_v8, %v534_v16  ;;  %v917_v47 = vmul.f32 %v534_v16, %v534_v16  ;;  %v536_v29 = vpop.f32.mrb[51].mxu0  ;;  %v1561_v63 = vpop.f32.mrb[51].mxu1 }
 0x145   :  { %1819 = vst [vmem:[#allocation13_spill] sm:$0xff] %v1561_v63  ;;  %v1087_v26 = vadd.f32 %v1086_v39, %v916_v55  ;;  %v822_v3 = vadd.f32 %v821_v12, %v536_v29  ;;  %v918_v23 = vmul.f32 %v536_v29, %v536_v29 }
 0x146   :  { %v1019_v31 = vadd.f32 %v1018_v9, %v917_v47 }
 0x147   :  { %v1088_v37 = vadd.f32 %v1087_v26, %v918_v23 }
 0x149   :  { %v540_v33 = vpop.f32.mrb[52].mxu0  ;;  %v1563_v52 = vpop.f32.mrb[52].mxu1 }
 0x14a   :  { %1820 = vst [vmem:[#allocation14_spill] sm:$0xff] %v1563_v52  ;;  %v754_v6 = vadd.f32 %v753_v17, %v540_v33  ;;  %v919_v19 = vmul.f32 %v540_v33, %v540_v33  ;;  %v542_v13 = vpop.f32.mrb[53].mxu0  ;;  %v1565_v61 = vpop.f32.mrb[53].mxu1 }
 0x14b   :  { %1821 = vst [vmem:[#allocation15_spill] sm:$0xff] %v1565_v61  ;;  %v823_v57 = vadd.f32 %v822_v3, %v542_v13  ;;  %v920_v41 = vmul.f32 %v542_v13, %v542_v13  ;;  %v544_v8 = vpop.f32.mrb[54].mxu0  ;;  %v1567_v45 = vpop.f32.mrb[54].mxu1 }
 0x14c   :  { %1822 = vst [vmem:[#allocation16_spill] sm:$0xff] %v1567_v45  ;;  %v1020_v16 = vadd.f32 %v1019_v31, %v919_v19  ;;  %v755_v63 = vadd.f32 %v754_v6, %v544_v8  ;;  %v921_v39 = vmul.f32 %v544_v8, %v544_v8  ;;  %v546_v12 = vpop.f32.mrb[55].mxu0  ;;  %v1569_v55 = vpop.f32.mrb[55].mxu1 }
 0x14d   :  { %1823 = vst [vmem:[#allocation17_spill] sm:$0xff] %v1569_v55  ;;  %v1089_v9 = vadd.f32 %v1088_v37, %v920_v41  ;;  %v824_v47 = vadd.f32 %v823_v57, %v546_v12  ;;  %v922_v29 = vmul.f32 %v546_v12, %v546_v12 }
 0x14e   :  { %v1021_v26 = vadd.f32 %v1020_v16, %v921_v39 }
 0x14f   :  { %v1090_v17 = vadd.f32 %v1089_v9, %v922_v29 }
 0x151   :  { %v550_v23 = vpop.f32.mrb[56].mxu0  ;;  %v1571_v33 = vpop.f32.mrb[56].mxu1 }
 0x152   :  { %1824 = vst [vmem:[#allocation18_spill] sm:$0xff] %v1571_v33  ;;  %v756_v61 = vadd.f32 %v755_v63, %v550_v23  ;;  %v923_v3 = vmul.f32 %v550_v23, %v550_v23  ;;  %v552_v13 = vpop.f32.mrb[57].mxu0  ;;  %v1573_v52 = vpop.f32.mrb[57].mxu1 }
 0x153   :  { %1825 = vst [vmem:[#allocation19_spill] sm:$0xff] %v1573_v52  ;;  %v825_v45 = vadd.f32 %v824_v47, %v552_v13  ;;  %v924_v31 = vmul.f32 %v552_v13, %v552_v13  ;;  %v554_v6 = vpop.f32.mrb[58].mxu0  ;;  %v1575_v19 = vpop.f32.mrb[58].mxu1 }
 0x154   :  { %1826 = vst [vmem:[#allocation20_spill] sm:$0xff] %v1575_v19  ;;  %v1022_v8 = vadd.f32 %v1021_v26, %v923_v3  ;;  %v757_v55 = vadd.f32 %v756_v61, %v554_v6  ;;  %v925_v37 = vmul.f32 %v554_v6, %v554_v6  ;;  %v556_v57 = vpop.f32.mrb[59].mxu0  ;;  %v1577_v41 = vpop.f32.mrb[59].mxu1 }
 0x155   :  { %1827 = vst [vmem:[#allocation21_spill] sm:$0xff] %v1577_v41  ;;  %v1091_v16 = vadd.f32 %v1090_v17, %v924_v31  ;;  %v826_v39 = vadd.f32 %v825_v45, %v556_v57  ;;  %v926_v12 = vmul.f32 %v556_v57, %v556_v57 }
 0x156   :  { %v1023_v9 = vadd.f32 %v1022_v8, %v925_v37 }
 0x157   :  { %v1092_v63 = vadd.f32 %v1091_v16, %v926_v12 }
 0x159   :  { %v560_v29 = vpop.f32.mrb[60].mxu0  ;;  %v1579_v23 = vpop.f32.mrb[60].mxu1 }
 0x15a   :  { %v758_v52 = vadd.f32 %v757_v55, %v560_v29  ;;  %v927_v47 = vmul.f32 %v560_v29, %v560_v29  ;;  %v562_v13 = vpop.f32.mrb[61].mxu0  ;;  %v1581_v33 = vpop.f32.mrb[61].mxu1  ;;  %v931_v55 = vmul.f32 %v1459_v42, %v1459_v42 }
 0x15b   :  { %v827_v19 = vadd.f32 %v826_v39, %v562_v13  ;;  %v928_v26 = vmul.f32 %v562_v13, %v562_v13  ;;  %v564_v61 = vpop.f32.mrb[62].mxu0  ;;  %v1583_v3 = vpop.f32.mrb[62].mxu1  ;;  %v932_v39 = vmul.f32 %v1461_v44, %v1461_v44 }
 0x15c   :  { %v1024_v6 = vadd.f32 %v1023_v9, %v927_v47  ;;  %v759_v41 = vadd.f32 %v758_v52, %v564_v61  ;;  %v929_v17 = vmul.f32 %v564_v61, %v564_v61  ;;  %v566_v45 = vpop.f32.mrb[63].mxu0  ;;  %v1585_v31 = vpop.f32.mrb[63].mxu1  ;;  %v933_v52 = vmul.f32 %v1463_v46, %v1463_v46 }
 0x15d   :  { %v1093_v8 = vadd.f32 %v1092_v63, %v928_v26  ;;  %v828_v37 = vadd.f32 %v827_v19, %v566_v45  ;;  %v930_v57 = vmul.f32 %v566_v45, %v566_v45  ;;  %v934_v19 = vmul.f32 %v1465_v51, %v1465_v51 }
 0x15e   :  { %v760_v16 = vadd.f32 %v759_v41, %v1459_v42  ;;  %v1025_v12 = vadd.f32 %v1024_v6, %v929_v17  ;;  %v935_v42 = vmul.f32 %v1467_v58, %v1467_v58 }
 0x15f   :  { %v829_v29 = vadd.f32 %v828_v37, %v1461_v44  ;;  %v1094_v9 = vadd.f32 %v1093_v8, %v930_v57  ;;  %v936_v44 = vmul.f32 %v1469_v62, %v1469_v62 }
 0x160   :  { %v761_v47 = vadd.f32 %v760_v16, %v1463_v46  ;;  %v1026_v63 = vadd.f32 %v1025_v12, %v931_v55  ;;  %v937_v46 = vmul.f32 %v1471_v2, %v1471_v2 }
 0x161   :  { %v830_v13 = vadd.f32 %v829_v29, %v1465_v51  ;;  %v1095_v26 = vadd.f32 %v1094_v9, %v932_v39  ;;  %v938_v51 = vmul.f32 %v1473_v7, %v1473_v7 }
 0x162   :  { %v762_v41 = vadd.f32 %v761_v47, %v1467_v58  ;;  %v1027_v61 = vadd.f32 %v1026_v63, %v933_v52  ;;  %v939_v58 = vmul.f32 %v1475_v14, %v1475_v14 }
 0x163   :  { %v831_v6 = vadd.f32 %v830_v13, %v1469_v62  ;;  %v1096_v17 = vadd.f32 %v1095_v26, %v934_v19  ;;  %v940_v62 = vmul.f32 %v1477_v18, %v1477_v18 }
 0x164   :  { %v763_v45 = vadd.f32 %v762_v41, %v1471_v2  ;;  %v1028_v8 = vadd.f32 %v1027_v61, %v935_v42  ;;  %v941_v2 = vmul.f32 %v1479_v22, %v1479_v22 }
 0x165   :  { %v832_v37 = vadd.f32 %v831_v6, %v1473_v7  ;;  %v1097_v57 = vadd.f32 %v1096_v17, %v936_v44  ;;  %v942_v7 = vmul.f32 %v1481_v27, %v1481_v27 }
 0x166   :  { %v764_v55 = vadd.f32 %v763_v45, %v1475_v14  ;;  %v1029_v16 = vadd.f32 %v1028_v8, %v937_v46  ;;  %v943_v14 = vmul.f32 %v1483_v34, %v1483_v34 }
 0x167   :  { %v833_v12 = vadd.f32 %v832_v37, %v1477_v18  ;;  %v1098_v39 = vadd.f32 %v1097_v57, %v938_v51  ;;  %v944_v18 = vmul.f32 %v1485_v38, %v1485_v38 }
 0x168   :  { %v765_v29 = vadd.f32 %v764_v55, %v1479_v22  ;;  %v1030_v9 = vadd.f32 %v1029_v16, %v939_v58  ;;  %v945_v22 = vmul.f32 %v1487_v43, %v1487_v43 }
 0x169   :  { %v834_v52 = vadd.f32 %v833_v12, %v1481_v27  ;;  %v1099_v47 = vadd.f32 %v1098_v39, %v940_v62  ;;  %v946_v27 = vmul.f32 %v1489_v50, %v1489_v50 }
 0x16a   :  { %v766_v63 = vadd.f32 %v765_v29, %v1483_v34  ;;  %v1031_v19 = vadd.f32 %v1030_v9, %v941_v2  ;;  %v947_v34 = vmul.f32 %v1491_v59, %v1491_v59 }
 0x16b   :  { %v835_v13 = vadd.f32 %v834_v52, %v1485_v38  ;;  %v1100_v26 = vadd.f32 %v1099_v47, %v942_v7  ;;  %v948_v38 = vmul.f32 %v1493_v0, %v1493_v0 }
 0x16c   :  { %v767_v42 = vadd.f32 %v766_v63, %v1487_v43  ;;  %v1032_v41 = vadd.f32 %v1031_v19, %v943_v14  ;;  %v949_v43 = vmul.f32 %v1495_v5, %v1495_v5 }
 0x16d   :  { %v836_v61 = vadd.f32 %v835_v13, %v1489_v50  ;;  %v1101_v44 = vadd.f32 %v1100_v26, %v944_v18  ;;  %v950_v50 = vmul.f32 %v1497_v11, %v1497_v11 }
 0x16e   :  { %v1033_v6 = vadd.f32 %v1032_v41, %v945_v22  ;;  %v768_v17 = vadd.f32 %v767_v42, %v1491_v59  ;;  %v951_v59 = vmul.f32 %v1499_v20, %v1499_v20 }
 0x16f   :  { %v1102_v46 = vadd.f32 %v1101_v44, %v946_v27  ;;  %v837_v45 = vadd.f32 %v836_v61, %v1493_v0  ;;  %v952_v0 = vmul.f32 %v1501_v25, %v1501_v25 }
 0x170   :  { %v769_v8 = vadd.f32 %v768_v17, %v1495_v5  ;;  %v1034_v51 = vadd.f32 %v1033_v6, %v947_v34  ;;  %v953_v5 = vmul.f32 %v1503_v30, %v1503_v30  ;;  %v963_v34 = vmul.f32 %v1523_v49, %v1523_v49 }
 0x171   :  { %v838_v37 = vadd.f32 %v837_v45, %v1497_v11  ;;  %v1103_v57 = vadd.f32 %v1102_v46, %v948_v38  ;;  %v954_v11 = vmul.f32 %v1505_v36, %v1505_v36  ;;  %v964_v17 = vmul.f32 %v1525_v56, %v1525_v56 }
 0x172   :  { %v770_v58 = vadd.f32 %v769_v8, %v1499_v20  ;;  %v1035_v55 = vadd.f32 %v1034_v51, %v949_v43  ;;  %v955_v20 = vmul.f32 %v1507_v48, %v1507_v48  ;;  %v965_v45 = vmul.f32 %v1527_v1, %v1527_v1 }
 0x173   :  { %v839_v16 = vadd.f32 %v838_v37, %v1501_v25  ;;  %v1104_v62 = vadd.f32 %v1103_v57, %v950_v50  ;;  %v956_v25 = vmul.f32 %v1509_v54, %v1509_v54  ;;  %v966_v8 = vmul.f32 %v1529_v10, %v1529_v10 }
 0x174   :  { %v771_v12 = vadd.f32 %v770_v58, %v1503_v30  ;;  %v1036_v39 = vadd.f32 %v1035_v55, %v951_v59  ;;  %v957_v30 = vmul.f32 %v1511_v60, %v1511_v60  ;;  %v967_v50 = vmul.f32 %v1531_v24, %v1531_v24 }
 0x175   :  { %v840_v2 = vadd.f32 %v839_v16, %v1505_v36  ;;  %v1105_v29 = vadd.f32 %v1104_v62, %v952_v0  ;;  %v958_v36 = vmul.f32 %v1513_v4, %v1513_v4  ;;  %v968_v57 = vmul.f32 %v1533_v32, %v1533_v32 }
 0x176   :  { %v772_v9 = vadd.f32 %v771_v12, %v1507_v48  ;;  %v1037_v7 = vadd.f32 %v1036_v39, %v953_v5  ;;  %v959_v48 = vmul.f32 %v1515_v15, %v1515_v15  ;;  %v969_v58 = vmul.f32 %v1535_v40, %v1535_v40 }
 0x177   :  { %v841_v52 = vadd.f32 %v840_v2, %v1509_v54  ;;  %v1106_v47 = vadd.f32 %v1105_v29, %v954_v11  ;;  %v960_v54 = vmul.f32 %v1517_v21, %v1517_v21  ;;  %v970_v0 = vmul.f32 %v1537_v53, %v1537_v53 }
 0x178   :  { %v773_v14 = vadd.f32 %v772_v9, %v1511_v60  ;;  %v1038_v63 = vadd.f32 %v1037_v7, %v955_v20  ;;  %v961_v60 = vmul.f32 %v1519_v28, %v1519_v28 }
 0x179   :  { %v842_v19 = vadd.f32 %v841_v52, %v1513_v4  ;;  %v1107_v18 = vadd.f32 %v1106_v47, %v956_v25  ;;  %v962_v4 = vmul.f32 %v1521_v35, %v1521_v35  ;;  %v1832_v47 = vld [vmem:[#allocation6_spill] sm:$0xff] }
 0x17a   :  { %v774_v13 = vadd.f32 %v773_v14, %v1515_v15  ;;  %v1039_v26 = vadd.f32 %v1038_v63, %v957_v30  ;;  %v975_v14 = vmul.f32 %v1832_v47, %v1832_v47 }
 0x17b   :  { %v843_v22 = vadd.f32 %v842_v19, %v1517_v21  ;;  %v1108_v42 = vadd.f32 %v1107_v18, %v958_v36  ;;  %v1833_v36 = vld [vmem:[#allocation7_spill] sm:$0xff] }
 0x17c   :  { %v775_v41 = vadd.f32 %v774_v13, %v1519_v28  ;;  %v1040_v27 = vadd.f32 %v1039_v26, %v959_v48  ;;  %v976_v18 = vmul.f32 %v1833_v36, %v1833_v36  ;;  %v1834_v13 = vld [vmem:[#allocation8_spill] sm:$0xff] }
 0x17d   :  { %v844_v61 = vadd.f32 %v843_v22, %v1521_v35  ;;  %v1109_v44 = vadd.f32 %v1108_v42, %v960_v54  ;;  %v977_v54 = vmul.f32 %v1834_v13, %v1834_v13  ;;  %v1835_v42 = vld [vmem:[#allocation9_spill] sm:$0xff] }
 0x17e   :  { %v776_v15 = vadd.f32 %v775_v41, %v1523_v49  ;;  %v1041_v6 = vadd.f32 %v1040_v27, %v961_v60  ;;  %v978_v41 = vmul.f32 %v1835_v42, %v1835_v42 }
 0x17f   :  { %v845_v21 = vadd.f32 %v844_v61, %v1525_v56  ;;  %v1110_v38 = vadd.f32 %v1109_v44, %v962_v4  ;;  %v1836_v4 = vld [vmem:[#allocation10_spill] sm:$0xff] }
 0x180   :  { %v1042_v28 = vadd.f32 %v1041_v6, %v963_v34  ;;  %v777_v46 = vadd.f32 %v776_v15, %v1527_v1  ;;  %v979_v44 = vmul.f32 %v1836_v4, %v1836_v4  ;;  %v1837_v34 = vld [vmem:[#allocation11_spill] sm:$0xff] }
 0x181   :  { %v1111_v35 = vadd.f32 %v1110_v38, %v964_v17  ;;  %v846_v43 = vadd.f32 %v845_v21, %v1529_v10  ;;  %v980_v21 = vmul.f32 %v1837_v34, %v1837_v34  ;;  %v1838_v38 = vld [vmem:[#allocation12_spill] sm:$0xff] }
 0x182   :  { %v1043_v49 = vadd.f32 %v1042_v28, %v965_v45  ;;  %v778_v51 = vadd.f32 %v777_v46, %v1531_v24  ;;  %v1828_v24 = vld [vmem:[#allocation2_spill] sm:$0xff]  ;;  %v981_v46 = vmul.f32 %v1838_v38, %v1838_v38 }
 0x183   :  { %v1112_v56 = vadd.f32 %v1111_v35, %v966_v8  ;;  %v847_v37 = vadd.f32 %v846_v43, %v1533_v32  ;;  %v971_v5 = vmul.f32 %v1828_v24, %v1828_v24  ;;  %v1829_v32 = vld [vmem:[#allocation3_spill] sm:$0xff]  ;;  %v1839_v35 = vld [vmem:[#allocation13_spill] sm:$0xff] }
 0x184   :  { %v1044_v59 = vadd.f32 %v1043_v49, %v967_v50  ;;  %v779_v1 = vadd.f32 %v778_v51, %v1535_v40  ;;  %v972_v11 = vmul.f32 %v1829_v32, %v1829_v32  ;;  %v1830_v40 = vld [vmem:[#allocation4_spill] sm:$0xff]  ;;  %v982_v8 = vmul.f32 %v1839_v35, %v1839_v35  ;;  %v1840_v51 = vld [vmem:[#allocation14_spill] sm:$0xff] }
 0x185   :  { %v1113_v55 = vadd.f32 %v1112_v56, %v968_v57  ;;  %v848_v10 = vadd.f32 %v847_v37, %v1537_v53  ;;  %v973_v20 = vmul.f32 %v1830_v40, %v1830_v40  ;;  %v1831_v53 = vld [vmem:[#allocation5_spill] sm:$0xff]  ;;  %v983_v56 = vmul.f32 %v1840_v51, %v1840_v51  ;;  %v1841_v57 = vld [vmem:[#allocation15_spill] sm:$0xff] }
 0x186   :  { %v1045_v16 = vadd.f32 %v1044_v59, %v969_v58  ;;  %v780_v62 = vadd.f32 %v779_v1, %v1828_v24  ;;  %v974_v25 = vmul.f32 %v1831_v53, %v1831_v53  ;;  %v984_v1 = vmul.f32 %v1841_v57, %v1841_v57  ;;  %v1843_v24 = vld [vmem:[#allocation17_spill] sm:$0xff] }
 0x187   :  { %v1114_v12 = vadd.f32 %v1113_v55, %v970_v0  ;;  %v849_v39 = vadd.f32 %v848_v10, %v1829_v32  ;;  %v1842_v55 = vld [vmem:[#allocation16_spill] sm:$0xff]  ;;  %v1844_v32 = vld [vmem:[#allocation18_spill] sm:$0xff] }
 0x188   :  { %v1046_v2 = vadd.f32 %v1045_v16, %v971_v5  ;;  %v781_v29 = vadd.f32 %v780_v62, %v1830_v40  ;;  %v985_v0 = vmul.f32 %v1842_v55, %v1842_v55  ;;  %v986_v5 = vmul.f32 %v1843_v24, %v1843_v24  ;;  %v1845_v40 = vld [vmem:[#allocation19_spill] sm:$0xff] }
 0x189   :  { %v1115_v9 = vadd.f32 %v1114_v12, %v972_v11  ;;  %v850_v7 = vadd.f32 %v849_v39, %v1831_v53  ;;  %v987_v11 = vmul.f32 %v1844_v32, %v1844_v32  ;;  %v1846_v53 = vld [vmem:[#allocation20_spill] sm:$0xff] }
 0x18a   :  { %v1047_v52 = vadd.f32 %v1046_v2, %v973_v20  ;;  %v782_v30 = vadd.f32 %v781_v29, %v1832_v47  ;;  %v988_v20 = vmul.f32 %v1845_v40, %v1845_v40 }
 0x18b   :  { %v1116_v63 = vadd.f32 %v1115_v9, %v974_v25  ;;  %v851_v19 = vadd.f32 %v850_v7, %v1833_v36  ;;  %v989_v25 = vmul.f32 %v1846_v53, %v1846_v53  ;;  %v992_v36 = vmul.f32 %v1581_v33, %v1581_v33 }
 0x18c   :  { %v1048_v48 = vadd.f32 %v1047_v52, %v975_v14  ;;  %v783_v26 = vadd.f32 %v782_v30, %v1834_v13  ;;  %v991_v52 = vmul.f32 %v1579_v23, %v1579_v23  ;;  %v1847_v30 = vld [vmem:[#allocation21_spill] sm:$0xff] }
 0x18d   :  { %v1117_v22 = vadd.f32 %v1116_v63, %v976_v18  ;;  %v852_v60 = vadd.f32 %v851_v19, %v1835_v42  ;;  %v990_v63 = vmul.f32 %v1847_v30, %v1847_v30 }
 0x18e   :  { %v1049_v27 = vadd.f32 %v1048_v48, %v977_v54  ;;  %v784_v61 = vadd.f32 %v783_v26, %v1836_v4 }
 0x18f   :  { %v1118_v15 = vadd.f32 %v1117_v22, %v978_v41  ;;  %v853_v6 = vadd.f32 %v852_v60, %v1837_v34  ;;  %v993_v22 = vmul.f32 %v1583_v3, %v1583_v3  ;;  %v994_v41 = vmul.f32 %v1585_v31, %v1585_v31 }
 0x190   :  { %v1050_v17 = vadd.f32 %v1049_v27, %v979_v44  ;;  %v785_v28 = vadd.f32 %v784_v61, %v1838_v38 }
 0x191   :  { %v1119_v45 = vadd.f32 %v1118_v15, %v980_v21  ;;  %v854_v43 = vadd.f32 %v853_v6, %v1839_v35 }
 0x192   :  { %v1051_v49 = vadd.f32 %v1050_v17, %v981_v46  ;;  %v786_v50 = vadd.f32 %v785_v28, %v1840_v51 }
 0x193   :  { %v1120_v37 = vadd.f32 %v1119_v45, %v982_v8  ;;  %v855_v59 = vadd.f32 %v854_v43, %v1841_v57 }
 0x194   :  { %v1052_v58 = vadd.f32 %v1051_v49, %v983_v56  ;;  %v787_v10 = vadd.f32 %v786_v50, %v1842_v55 }
 0x195   :  { %v1121_v16 = vadd.f32 %v1120_v37, %v984_v1  ;;  %v856_v62 = vadd.f32 %v855_v59, %v1843_v24 }
 0x196   :  { %v1053_v12 = vadd.f32 %v1052_v58, %v985_v0  ;;  %v788_v39 = vadd.f32 %v787_v10, %v1844_v32 }
 0x197   :  { %v1122_v2 = vadd.f32 %v1121_v16, %v986_v5  ;;  %v857_v29 = vadd.f32 %v856_v62, %v1845_v40 }
 0x198   :  { %v1054_v9 = vadd.f32 %v1053_v12, %v987_v11  ;;  %v789_v7 = vadd.f32 %v788_v39, %v1846_v53 }
 0x199   :  { %v1123_v47 = vadd.f32 %v1122_v2, %v988_v20  ;;  %v858_v14 = vadd.f32 %v857_v29, %v1847_v30 }
 0x19a   :  { %v1055_v19 = vadd.f32 %v1054_v9, %v989_v25  ;;  %v790_v18 = vadd.f32 %v789_v7, %v1579_v23 }
 0x19b   :  { %v1124_v48 = vadd.f32 %v1123_v47, %v990_v63  ;;  %v859_v13 = vadd.f32 %v858_v14, %v1581_v33 }
 0x19c   :  { %v1056_v26 = vadd.f32 %v1055_v19, %v991_v52  ;;  %v791_v54 = vadd.f32 %v790_v18, %v1583_v3 }
 0x19d   :  { %v1125_v42 = vadd.f32 %v1124_v48, %v992_v36  ;;  %v860_v60 = vadd.f32 %v859_v13, %v1585_v31 }
 0x19e   :  { %v792_v27 = vrot.slane %v791_v54, 4  ;;  %v1057_v4 = vadd.f32 %v1056_v26, %v993_v22 }
 0x19f   :  { %v861_v61 = vrot.slane %v860_v60, 4  ;;  %v1126_v44 = vadd.f32 %v1125_v42, %v994_v41 }
 0x1a0   :  { %v793_v23 = vadd.f32 %v792_v27, %v791_v54  ;;  %v1058_v15 = vrot.slane %v1057_v4, 4 }
 0x1a1   :  { %v862_v34 = vadd.f32 %v861_v61, %v860_v60  ;;  %v1127_v33 = vrot.slane %v1126_v44, 4 }
 0x1a2   :  { %v794_v6 = vrot.slane %v793_v23, 2  ;;  %v1059_v21 = vadd.f32 %v1058_v15, %v1057_v4 }
 0x1a3   :  { %v863_v17 = vrot.slane %v862_v34, 2  ;;  %v1128_v38 = vadd.f32 %v1127_v33, %v1126_v44 }
 0x1a4   :  { %v795_v28 = vadd.f32 %v794_v6, %v793_v23  ;;  %v1060_v3 = vrot.slane %v1059_v21, 2 }
 0x1a5   :  { %v864_v46 = vadd.f32 %v863_v17, %v862_v34  ;;  %v1129_v45 = vrot.slane %v1128_v38, 2 }
 0x1a6   :  { %v796_v35 = vrot.slane %v795_v28, 1  ;;  %v1061_v43 = vadd.f32 %v1060_v3, %v1059_v21 }
 0x1a7   :  { %v865_v8 = vrot.slane %v864_v46, 1  ;;  %v1130_v31 = vadd.f32 %v1129_v45, %v1128_v38 }
 0x1a8   :  { %v1062_v49 = vrot.slane %v1061_v43, 1  ;;  %v797_v50 = vadd.f32 %v796_v35, %v795_v28 }
 0x1a9   :  { %v1131_v51 = vrot.slane %v1130_v31, 1  ;;  %v866_v37 = vadd.f32 %v865_v8, %v864_v46 }
 0x1aa   :  { %v1063_v56 = vadd.f32 %v1062_v49, %v1061_v43 }
 0x1ab   :  { %v1132_v57 = vadd.f32 %v1131_v51, %v1130_v31 }
 0x1ac   :  { %v1136_v59 = vsel %vm1135_vm2, %v797_v50, %v1063_v56 }
 0x1ad   :  { %v1137_v1 = vsel %vm1135_vm2, %v866_v37, %v1132_v57  ;;  %v1139_v58 = vsel %vm1138_vm3, %v1136_v59, 0.0 }
 0x1ae   :  { %v1140_v55 = vsel %vm1138_vm3, %v1137_v1, 0.0  ;;  %1143 = vst [vmem:[%s1787_s2] sm:$0xff] %v1139_v58 }
 0x1af   :  { %1144 = vst [vmem:[%s1787_s2 + $0x8] sm:$0xff] %v1140_v55 }

// kernel: residual_block_forward.3
= control target key start
LH: loop header
LB: loop body
LE: loop exit
PB: predicated region body
PF: predicated region fallthrough
CT: control target
= control target key end

     0   :  { %v1378_v1 = vmov 0   ;;  %vm366_vm0 = vcmask 1043456   ;;  %vm269_vm1 = vcmask 326656   ;;  %v728_v41 = vlaneseq  ;;  %s2036_s1 = inlined_call_operand.vmem [shape: bf16[40,256], index: 1, kind: input, shape index: {}]   ;;  %s2037_s0 = inlined_call_operand.vmem [shape: bf16[512,40], index: 0, kind: input, shape index: {}]   ;;  %s2038_s2 = inlined_call_operand.vmem [shape: f32[8,256], index: 2, kind: input, shape index: {}]   ;;  %s2039_s3 = inlined_call_operand.vmem [shape: f32[512,128], index: 3, kind: output, shape index: {}]  }
   0x1   :  { %v1338_v0 = vld [vmem:[%s2036_s1 + $0x4] ss:$8 sps:$4 sm:$0xff]   ;;  %405 = vmatprep.mubr.bf16.mxu0 %v1378_v1  ;;  %565 = vmatprep.mubr.bf16.mxu1 %v1378_v1  ;;  %v1340_v2 = vld [vmem:[%s2036_s1] ss:$8 sps:$4 sm:$0xff]   ;;  %v1341_v3 = vld [vmem:[%s2036_s1 + $0x14] ss:$8 sps:$4 sm:$0xff]  }
   0x2   :  { %373 = vmatprep.subr.bf16.mxu0 %v1338_v0  ;;  %1331 = vmatprep.subr.bf16.mxu1 %v1338_v0  ;;  %v83_v4 = vld [vmem:[%s2036_s1 + $0x20] sm:$0xff]  ;;  %v1343_v5 = vld [vmem:[%s2036_s1 + $0x10] ss:$8 sps:$4 sm:$0xff]   ;;  %v1348_v11 = vld [vmem:[%s2037_s0 + $0x8] sm:$0xff]   ;;  %v729_v42 = vshrl.u32 %v728_v41, 7 }
   0x3   :  { %374 = vmatpush1.bf16.msra.mxu0 %v1340_v2  ;;  %1334 = vmatpush1.bf16.msra.mxu1 %v1340_v2  ;;  %v1297_v6 = vcombine.high %v83_v4, %v83_v4  ;;  %v1296_v7 = vcombine.low %v83_v4, %v83_v4  ;;  %v1346_v9 = vld [vmem:[%s2037_s0] sm:$0xff]   ;;  %v1349_v12 = vld [vmem:[%s2037_s0 + $0x88] sm:$0xff]   ;;  %v1350_v13 = vld [vmem:[%s2037_s0 + $0x10] sm:$0xff]  }
   0x4   :  { %375 = vmatprep.subr.bf16.mxu0 %v1341_v3  ;;  %1332 = vmatprep.subr.bf16.mxu1 %v1341_v3  ;;  %v1347_v10 = vld [vmem:[%s2037_s0 + $0x80] sm:$0xff]   ;;  %v1351_v14 = vld [vmem:[%s2037_s0 + $0x90] sm:$0xff]   ;;  %v1352_v15 = vld [vmem:[%s2037_s0 + $0x18] sm:$0xff]   ;;  %v730_v43 = vsub.s32 0, %v729_v42  ;;  %v866_v45 = vsub.s32 1, %v729_v42 }
   0x5   :  { %v368_v8 = vsel %vm366_vm0, %v1296_v7, 0  ;;  %v1353_v16 = vld [vmem:[%s2037_s0 + $0x98] sm:$0xff]   ;;  %v1354_v17 = vld [vmem:[%s2037_s0 + $0x20] sm:$0xff]   ;;  %v1356_v19 = vld [vmem:[%s2037_s0 + $0x28] sm:$0xff]  }
   0x6   :  { %v1355_v18 = vld [vmem:[%s2037_s0 + $0xa0] sm:$0xff]   ;;  %v1357_v20 = vld [vmem:[%s2037_s0 + $0xa8] sm:$0xff]   ;;  %v1358_v21 = vld [vmem:[%s2037_s0 + $0x30] sm:$0xff]  }
   0x7   :  { %376 = vmatpush1.bf16.msra.mxu0 %v1343_v5  ;;  %1335 = vmatpush1.bf16.msra.mxu1 %v1343_v5  ;;  %v1359_v22 = vld [vmem:[%s2037_s0 + $0xb0] sm:$0xff]   ;;  %v1360_v23 = vld [vmem:[%s2037_s0 + $0x38] sm:$0xff]   ;;  %v1362_v25 = vld [vmem:[%s2037_s0 + $0x40] sm:$0xff]  }
   0x8   :  { %1298 = vmatprep.subr.msk.bf16.mxu0 %vm366_vm0, %v1297_v6  ;;  %1333 = vmatprep.subr.msk.bf16.mxu1 %vm366_vm0, %v1297_v6  ;;  %v1361_v24 = vld [vmem:[%s2037_s0 + $0xb8] sm:$0xff]   ;;  %v1363_v26 = vld [vmem:[%s2037_s0 + $0xc0] sm:$0xff]   ;;  %v1364_v27 = vld [vmem:[%s2037_s0 + $0x48] sm:$0xff]  }
   0x9   :  { %v1365_v28 = vld [vmem:[%s2037_s0 + $0xc8] sm:$0xff]   ;;  %v1366_v29 = vld [vmem:[%s2037_s0 + $0x50] sm:$0xff]   ;;  %v1368_v31 = vld [vmem:[%s2037_s0 + $0x58] sm:$0xff]  }
   0xa   :  { %v1367_v30 = vld [vmem:[%s2037_s0 + $0xd0] sm:$0xff]   ;;  %v1369_v32 = vld [vmem:[%s2037_s0 + $0xd8] sm:$0xff]   ;;  %v1370_v33 = vld [vmem:[%s2037_s0 + $0x60] sm:$0xff]  }
   0xb   :  { %378 = vmatpush1.bf16.msra.mxu0 %v368_v8  ;;  %1336 = vmatpush1.bf16.msra.mxu1 %v368_v8  ;;  %v1371_v34 = vld [vmem:[%s2037_s0 + $0xe0] sm:$0xff]   ;;  %v1372_v35 = vld [vmem:[%s2037_s0 + $0x68] sm:$0xff]   ;;  %v1374_v37 = vld [vmem:[%s2037_s0 + $0x70] sm:$0xff]  }
   0xc   :  { %v1373_v36 = vld [vmem:[%s2037_s0 + $0xe8] sm:$0xff]   ;;  %v1375_v38 = vld [vmem:[%s2037_s0 + $0xf0] sm:$0xff]   ;;  %v1376_v39 = vld [vmem:[%s2037_s0 + $0x78] sm:$0xff]  }
   0xd   :  { %v1377_v40 = vld [vmem:[%s2037_s0 + $0xf8] sm:$0xff]   ;;  %v726_v44 = vld [vmem:[%s2038_s2] sm:$0xff]  ;;  %v727_v46 = vld [vmem:[%s2038_s2 + $0x8] sm:$0xff] }
   0xe   :  { %1299 = vmatmul.mubr.msk.bf16.vlgmr.msra.gmra.mrb[0].mxu0 %vm269_vm1, %v1346_v9  ;;  %1315 = vmatmul.mubr.msk.bf16.vlgmr.msra.gmra.mrb[0].mxu1 %vm269_vm1, %v1347_v10  ;;  %v1580_v47 = vrot.slane %v726_v44, %v730_v43  ;;  %v1582_v48 = vrot.slane %v727_v46, %v730_v43  ;;  %v1584_v49 = vrot.slane %v726_v44, %v866_v45 }
   0xf   :  { %415 = vmatprep.mubr.bf16.mxu0 %v1378_v1  ;;  %575 = vmatprep.mubr.bf16.mxu1 %v1378_v1  ;;  %v1586_v52 = vrot.slane %v727_v46, %v866_v45 }
  0x16   :  { %1300 = vmatmul.mubr.msk.bf16.gmra.mrb[4].mxu0 %vm269_vm1, %v1348_v11  ;;  %1316 = vmatmul.mubr.msk.bf16.gmra.mrb[4].mxu1 %vm269_vm1, %v1349_v12 }
  0x17   :  { %425 = vmatprep.mubr.bf16.mxu0 %v1378_v1  ;;  %585 = vmatprep.mubr.bf16.mxu1 %v1378_v1 }
  0x1e   :  { %1301 = vmatmul.mubr.msk.bf16.gmra.mrb[8].mxu0 %vm269_vm1, %v1350_v13  ;;  %1317 = vmatmul.mubr.msk.bf16.gmra.mrb[8].mxu1 %vm269_vm1, %v1351_v14 }
  0x1f   :  { %435 = vmatprep.mubr.bf16.mxu0 %v1378_v1  ;;  %595 = vmatprep.mubr.bf16.mxu1 %v1378_v1 }
  0x26   :  { %1302 = vmatmul.mubr.msk.bf16.gmra.mrb[12].mxu0 %vm269_vm1, %v1352_v15  ;;  %1318 = vmatmul.mubr.msk.bf16.gmra.mrb[12].mxu1 %vm269_vm1, %v1353_v16 }
  0x27   :  { %445 = vmatprep.mubr.bf16.mxu0 %v1378_v1  ;;  %605 = vmatprep.mubr.bf16.mxu1 %v1378_v1 }
  0x2e   :  { %1303 = vmatmul.mubr.msk.bf16.gmra.mrb[16].mxu0 %vm269_vm1, %v1354_v17  ;;  %1319 = vmatmul.mubr.msk.bf16.gmra.mrb[16].mxu1 %vm269_vm1, %v1355_v18 }
  0x2f   :  { %455 = vmatprep.mubr.bf16.mxu0 %v1378_v1  ;;  %615 = vmatprep.mubr.bf16.mxu1 %v1378_v1 }
  0x36   :  { %1304 = vmatmul.mubr.msk.bf16.gmra.mrb[20].mxu0 %vm269_vm1, %v1356_v19  ;;  %1320 = vmatmul.mubr.msk.bf16.gmra.mrb[20].mxu1 %vm269_vm1, %v1357_v20 }
  0x37   :  { %465 = vmatprep.mubr.bf16.mxu0 %v1378_v1  ;;  %625 = vmatprep.mubr.bf16.mxu1 %v1378_v1 }
  0x3e   :  { %1305 = vmatmul.mubr.msk.bf16.gmra.mrb[24].mxu0 %vm269_vm1, %v1358_v21  ;;  %1321 = vmatmul.mubr.msk.bf16.gmra.mrb[24].mxu1 %vm269_vm1, %v1359_v22 }
  0x3f   :  { %475 = vmatprep.mubr.bf16.mxu0 %v1378_v1  ;;  %635 = vmatprep.mubr.bf16.mxu1 %v1378_v1 }
  0x46   :  { %1306 = vmatmul.mubr.msk.bf16.gmra.mrb[28].mxu0 %vm269_vm1, %v1360_v23  ;;  %1322 = vmatmul.mubr.msk.bf16.gmra.mrb[28].mxu1 %vm269_vm1, %v1361_v24 }
  0x47   :  { %485 = vmatprep.mubr.bf16.mxu0 %v1378_v1  ;;  %645 = vmatprep.mubr.bf16.mxu1 %v1378_v1 }
  0x4e   :  { %1307 = vmatmul.mubr.msk.bf16.gmra.mrb[32].mxu0 %vm269_vm1, %v1362_v25  ;;  %1323 = vmatmul.mubr.msk.bf16.gmra.mrb[32].mxu1 %vm269_vm1, %v1363_v26 }
  0x4f   :  { %495 = vmatprep.mubr.bf16.mxu0 %v1378_v1  ;;  %655 = vmatprep.mubr.bf16.mxu1 %v1378_v1 }
  0x56   :  { %1308 = vmatmul.mubr.msk.bf16.gmra.mrb[36].mxu0 %vm269_vm1, %v1364_v27  ;;  %1324 = vmatmul.mubr.msk.bf16.gmra.mrb[36].mxu1 %vm269_vm1, %v1365_v28 }
  0x57   :  { %505 = vmatprep.mubr.bf16.mxu0 %v1378_v1  ;;  %665 = vmatprep.mubr.bf16.mxu1 %v1378_v1 }
  0x5e   :  { %1309 = vmatmul.mubr.msk.bf16.gmra.mrb[40].mxu0 %vm269_vm1, %v1366_v29  ;;  %1325 = vmatmul.mubr.msk.bf16.gmra.mrb[40].mxu1 %vm269_vm1, %v1367_v30 }
  0x5f   :  { %515 = vmatprep.mubr.bf16.mxu0 %v1378_v1  ;;  %675 = vmatprep.mubr.bf16.mxu1 %v1378_v1 }
  0x66   :  { %1310 = vmatmul.mubr.msk.bf16.gmra.mrb[44].mxu0 %vm269_vm1, %v1368_v31  ;;  %1326 = vmatmul.mubr.msk.bf16.gmra.mrb[44].mxu1 %vm269_vm1, %v1369_v32 }
  0x67   :  { %525 = vmatprep.mubr.bf16.mxu0 %v1378_v1  ;;  %685 = vmatprep.mubr.bf16.mxu1 %v1378_v1 }
  0x6e   :  { %1311 = vmatmul.mubr.msk.bf16.gmra.mrb[48].mxu0 %vm269_vm1, %v1370_v33  ;;  %1327 = vmatmul.mubr.msk.bf16.gmra.mrb[48].mxu1 %vm269_vm1, %v1371_v34 }
  0x6f   :  { %535 = vmatprep.mubr.bf16.mxu0 %v1378_v1  ;;  %695 = vmatprep.mubr.bf16.mxu1 %v1378_v1 }
  0x76   :  { %1312 = vmatmul.mubr.msk.bf16.gmra.mrb[52].mxu0 %vm269_vm1, %v1372_v35  ;;  %1328 = vmatmul.mubr.msk.bf16.gmra.mrb[52].mxu1 %vm269_vm1, %v1373_v36 }
  0x77   :  { %545 = vmatprep.mubr.bf16.mxu0 %v1378_v1  ;;  %705 = vmatprep.mubr.bf16.mxu1 %v1378_v1 }
  0x7e   :  { %1313 = vmatmul.mubr.msk.bf16.gmra.mrb[56].mxu0 %vm269_vm1, %v1374_v37  ;;  %1329 = vmatmul.mubr.msk.bf16.gmra.mrb[56].mxu1 %vm269_vm1, %v1375_v38 }
  0x7f   :  { %555 = vmatprep.mubr.bf16.mxu0 %v1378_v1  ;;  %715 = vmatprep.mubr.bf16.mxu1 %v1378_v1 }
  0x86   :  { %1314 = vmatmul.mubr.msk.bf16.gmra.mrb[60].mxu0 %vm269_vm1, %v1376_v39  ;;  %1330 = vmatmul.mubr.msk.bf16.gmra.mrb[60].mxu1 %vm269_vm1, %v1377_v40 }
  0xe1   :  { %v407_v50 = vpop.f32.mrb[0].mxu0  ;;  %v567_v51 = vpop.f32.mrb[0].mxu1 }
  0xe2   :  { %v736_v53 = vmul.f32 %v1580_v47, %v407_v50  ;;  %v800_v54 = vmul.f32 %v1580_v47, %v567_v51  ;;  %v409_v55 = vpop.f32.mrb[1].mxu0  ;;  %v569_v56 = vpop.f32.mrb[1].mxu1 }
  0xe3   :  { %v737_v57 = vmul.f32 %v1582_v48, %v409_v55  ;;  %v801_v58 = vmul.f32 %v1582_v48, %v569_v56  ;;  %v411_v59 = vpop.f32.mrb[2].mxu0  ;;  %v571_v60 = vpop.f32.mrb[2].mxu1 }
  0xe4   :  { %v872_v61 = vadd.f32 %v1584_v49, %v736_v53  ;;  %v936_v62 = vadd.f32 %v1584_v49, %v800_v54  ;;  %v738_v63 = vmul.f32 %v1580_v47, %v411_v59  ;;  %v802_v0 = vmul.f32 %v1580_v47, %v571_v60  ;;  %v413_v1 = vpop.f32.mrb[3].mxu0  ;;  %v573_v2 = vpop.f32.mrb[3].mxu1 }
  0xe5   :  { %v873_v3 = vadd.f32 %v1586_v52, %v737_v57  ;;  %v937_v4 = vadd.f32 %v1586_v52, %v801_v58  ;;  %v739_v5 = vmul.f32 %v1582_v48, %v413_v1  ;;  %v803_v6 = vmul.f32 %v1582_v48, %v573_v2 }
  0xe6   :  { %v1000_v7 = vmax.f32 %v872_v61, 0.0  ;;  %v1032_v8 = vmax.f32 %v936_v62, 0.0  ;;  %v874_v9 = vadd.f32 %v1584_v49, %v738_v63  ;;  %v938_v10 = vadd.f32 %v1584_v49, %v802_v0 }
  0xe7   :  { %v875_v11 = vadd.f32 %v1586_v52, %v739_v5  ;;  %v939_v12 = vadd.f32 %v1586_v52, %v803_v6 }
  0xe8   :  { %v1064_v13 = vadd.f32 %v1000_v7, %v873_v3  ;;  %v1096_v14 = vadd.f32 %v1032_v8, %v937_v4  ;;  %v1001_v15 = vmax.f32 %v874_v9, 0.0  ;;  %v1033_v16 = vmax.f32 %v938_v10, 0.0 }
  0xe9   :  { %v417_v17 = vpop.f32.mrb[4].mxu0  ;;  %v577_v18 = vpop.f32.mrb[4].mxu1 }
  0xea   :  { %v1128_v19 = vmax.f32 %v1064_v13, 0.0  ;;  %v1160_v20 = vmax.f32 %v1096_v14, 0.0  ;;  %v1065_v21 = vadd.f32 %v1001_v15, %v875_v11  ;;  %v1097_v22 = vadd.f32 %v1033_v16, %v939_v12  ;;  %v419_v23 = vpop.f32.mrb[5].mxu0  ;;  %v579_v24 = vpop.f32.mrb[5].mxu1 }
  0xeb   :  { %v740_v25 = vmul.f32 %v1580_v47, %v417_v17  ;;  %v804_v26 = vmul.f32 %v1580_v47, %v577_v18  ;;  %v741_v27 = vmul.f32 %v1582_v48, %v419_v23  ;;  %v805_v28 = vmul.f32 %v1582_v48, %v579_v24  ;;  %v421_v29 = vpop.f32.mrb[6].mxu0  ;;  %v581_v30 = vpop.f32.mrb[6].mxu1 }
  0xec   :  { %1192 = vst [vmem:[%s2039_s3] sm:$0xff] %v1128_v19  ;;  %1224 = vst [vmem:[%s2039_s3 + $0x100] sm:$0xff] %v1160_v20  ;;  %v1129_v31 = vmax.f32 %v1065_v21, 0.0  ;;  %v1161_v32 = vmax.f32 %v1097_v22, 0.0  ;;  %v742_v33 = vmul.f32 %v1580_v47, %v421_v29  ;;  %v806_v34 = vmul.f32 %v1580_v47, %v581_v30  ;;  %v423_v35 = vpop.f32.mrb[7].mxu0  ;;  %v583_v36 = vpop.f32.mrb[7].mxu1 }
  0xed   :  { %v876_v37 = vadd.f32 %v1584_v49, %v740_v25  ;;  %v940_v38 = vadd.f32 %v1584_v49, %v804_v26  ;;  %v877_v39 = vadd.f32 %v1586_v52, %v741_v27  ;;  %v941_v40 = vadd.f32 %v1586_v52, %v805_v28 }
  0xee   :  { %1193 = vst [vmem:[%s2039_s3 + $0x8] sm:$0xff] %v1129_v31  ;;  %1225 = vst [vmem:[%s2039_s3 + $0x108] sm:$0xff] %v1161_v32  ;;  %v878_v41 = vadd.f32 %v1584_v49, %v742_v33  ;;  %v942_v42 = vadd.f32 %v1584_v49, %v806_v34  ;;  %v743_v43 = vmul.f32 %v1582_v48, %v423_v35 }
  0xef   :  { %v807_v44 = vmul.f32 %v1582_v48, %v583_v36  ;;  %v1002_v45 = vmax.f32 %v876_v37, 0.0  ;;  %v1034_v46 = vmax.f32 %v940_v38, 0.0 }
  0xf0   :  { %v1003_v50 = vmax.f32 %v878_v41, 0.0  ;;  %v1035_v51 = vmax.f32 %v942_v42, 0.0  ;;  %v879_v53 = vadd.f32 %v1586_v52, %v743_v43 }
  0xf1   :  { %v943_v54 = vadd.f32 %v1586_v52, %v807_v44  ;;  %v1066_v55 = vadd.f32 %v1002_v45, %v877_v39  ;;  %v1098_v56 = vadd.f32 %v1034_v46, %v941_v40  ;;  %v427_v57 = vpop.f32.mrb[8].mxu0  ;;  %v587_v58 = vpop.f32.mrb[8].mxu1 }
  0xf2   :  { %v1067_v59 = vadd.f32 %v1003_v50, %v879_v53  ;;  %v744_v61 = vmul.f32 %v1580_v47, %v427_v57  ;;  %v808_v62 = vmul.f32 %v1580_v47, %v587_v58  ;;  %v429_v63 = vpop.f32.mrb[9].mxu0  ;;  %v589_v0 = vpop.f32.mrb[9].mxu1 }
  0xf3   :  { %v1099_v60 = vadd.f32 %v1035_v51, %v943_v54  ;;  %v1130_v1 = vmax.f32 %v1066_v55, 0.0  ;;  %v1162_v2 = vmax.f32 %v1098_v56, 0.0  ;;  %v745_v3 = vmul.f32 %v1582_v48, %v429_v63  ;;  %v431_v5 = vpop.f32.mrb[10].mxu0  ;;  %v591_v6 = vpop.f32.mrb[10].mxu1 }
  0xf4   :  { %v809_v4 = vmul.f32 %v1582_v48, %v589_v0  ;;  %v1131_v7 = vmax.f32 %v1067_v59, 0.0  ;;  %v880_v9 = vadd.f32 %v1584_v49, %v744_v61  ;;  %v944_v10 = vadd.f32 %v1584_v49, %v808_v62  ;;  %v433_v11 = vpop.f32.mrb[11].mxu0  ;;  %v593_v12 = vpop.f32.mrb[11].mxu1 }
  0xf5   :  { %v1163_v8 = vmax.f32 %v1099_v60, 0.0  ;;  %1194 = vst [vmem:[%s2039_s3 + $0x10] sm:$0xff] %v1130_v1  ;;  %1226 = vst [vmem:[%s2039_s3 + $0x110] sm:$0xff] %v1162_v2  ;;  %v881_v13 = vadd.f32 %v1586_v52, %v745_v3  ;;  %v746_v15 = vmul.f32 %v1580_v47, %v431_v5  ;;  %v810_v16 = vmul.f32 %v1580_v47, %v591_v6 }
  0xf6   :  { %v945_v14 = vadd.f32 %v1586_v52, %v809_v4  ;;  %1195 = vst [vmem:[%s2039_s3 + $0x18] sm:$0xff] %v1131_v7  ;;  %v1004_v17 = vmax.f32 %v880_v9, 0.0  ;;  %v1036_v18 = vmax.f32 %v944_v10, 0.0  ;;  %v747_v19 = vmul.f32 %v1582_v48, %v433_v11 }
  0xf7   :  { %1227 = vst [vmem:[%s2039_s3 + $0x118] sm:$0xff] %v1163_v8  ;;  %v811_v20 = vmul.f32 %v1582_v48, %v593_v12  ;;  %v882_v21 = vadd.f32 %v1584_v49, %v746_v15  ;;  %v946_v22 = vadd.f32 %v1584_v49, %v810_v16 }
  0xf8   :  { %v1068_v23 = vadd.f32 %v1004_v17, %v881_v13  ;;  %v1100_v24 = vadd.f32 %v1036_v18, %v945_v14  ;;  %v883_v25 = vadd.f32 %v1586_v52, %v747_v19 }
  0xf9   :  { %v947_v26 = vadd.f32 %v1586_v52, %v811_v20  ;;  %v1005_v27 = vmax.f32 %v882_v21, 0.0  ;;  %v1037_v28 = vmax.f32 %v946_v22, 0.0  ;;  %v437_v29 = vpop.f32.mrb[12].mxu0  ;;  %v597_v30 = vpop.f32.mrb[12].mxu1 }
  0xfa   :  { %v1132_v31 = vmax.f32 %v1068_v23, 0.0  ;;  %v1164_v32 = vmax.f32 %v1100_v24, 0.0  ;;  %v748_v33 = vmul.f32 %v1580_v47, %v437_v29  ;;  %v812_v34 = vmul.f32 %v1580_v47, %v597_v30  ;;  %v439_v35 = vpop.f32.mrb[13].mxu0  ;;  %v599_v36 = vpop.f32.mrb[13].mxu1 }
  0xfb   :  { %v1069_v37 = vadd.f32 %v1005_v27, %v883_v25  ;;  %v1101_v38 = vadd.f32 %v1037_v28, %v947_v26  ;;  %v749_v39 = vmul.f32 %v1582_v48, %v439_v35  ;;  %v813_v40 = vmul.f32 %v1582_v48, %v599_v36  ;;  %v441_v41 = vpop.f32.mrb[14].mxu0  ;;  %v601_v42 = vpop.f32.mrb[14].mxu1 }
  0xfc   :  { %1196 = vst [vmem:[%s2039_s3 + $0x20] sm:$0xff] %v1132_v31  ;;  %1228 = vst [vmem:[%s2039_s3 + $0x120] sm:$0xff] %v1164_v32  ;;  %v884_v43 = vadd.f32 %v1584_v49, %v748_v33  ;;  %v948_v44 = vadd.f32 %v1584_v49, %v812_v34  ;;  %v750_v45 = vmul.f32 %v1580_v47, %v441_v41  ;;  %v443_v50 = vpop.f32.mrb[15].mxu0  ;;  %v603_v51 = vpop.f32.mrb[15].mxu1 }
  0xfd   :  { %v814_v46 = vmul.f32 %v1580_v47, %v601_v42  ;;  %v1133_v53 = vmax.f32 %v1069_v37, 0.0  ;;  %v1165_v54 = vmax.f32 %v1101_v38, 0.0  ;;  %v885_v55 = vadd.f32 %v1586_v52, %v749_v39 }
  0xfe   :  { %v949_v56 = vadd.f32 %v1586_v52, %v813_v40  ;;  %v1006_v57 = vmax.f32 %v884_v43, 0.0  ;;  %v1038_v58 = vmax.f32 %v948_v44, 0.0  ;;  %v886_v59 = vadd.f32 %v1584_v49, %v750_v45 }
  0xff   :  { %v950_v60 = vadd.f32 %v1584_v49, %v814_v46  ;;  %1197 = vst [vmem:[%s2039_s3 + $0x28] sm:$0xff] %v1133_v53  ;;  %1229 = vst [vmem:[%s2039_s3 + $0x128] sm:$0xff] %v1165_v54  ;;  %v751_v61 = vmul.f32 %v1582_v48, %v443_v50  ;;  %v815_v62 = vmul.f32 %v1582_v48, %v603_v51 }
 0x100   :  { %v1070_v63 = vadd.f32 %v1006_v57, %v885_v55  ;;  %v1102_v0 = vadd.f32 %v1038_v58, %v949_v56  ;;  %v1007_v1 = vmax.f32 %v886_v59, 0.0 }
 0x101   :  { %v1039_v2 = vmax.f32 %v950_v60, 0.0  ;;  %v887_v3 = vadd.f32 %v1586_v52, %v751_v61  ;;  %v951_v4 = vadd.f32 %v1586_v52, %v815_v62  ;;  %v447_v5 = vpop.f32.mrb[16].mxu0  ;;  %v607_v6 = vpop.f32.mrb[16].mxu1 }
 0x102   :  { %v1134_v7 = vmax.f32 %v1070_v63, 0.0  ;;  %v1166_v8 = vmax.f32 %v1102_v0, 0.0  ;;  %v752_v9 = vmul.f32 %v1580_v47, %v447_v5  ;;  %v816_v10 = vmul.f32 %v1580_v47, %v607_v6  ;;  %v449_v11 = vpop.f32.mrb[17].mxu0  ;;  %v609_v12 = vpop.f32.mrb[17].mxu1 }
 0x103   :  { %v1071_v13 = vadd.f32 %v1007_v1, %v887_v3  ;;  %v1103_v14 = vadd.f32 %v1039_v2, %v951_v4  ;;  %v753_v15 = vmul.f32 %v1582_v48, %v449_v11  ;;  %v817_v16 = vmul.f32 %v1582_v48, %v609_v12  ;;  %v451_v17 = vpop.f32.mrb[18].mxu0  ;;  %v611_v18 = vpop.f32.mrb[18].mxu1 }
 0x104   :  { %1198 = vst [vmem:[%s2039_s3 + $0x30] sm:$0xff] %v1134_v7  ;;  %1230 = vst [vmem:[%s2039_s3 + $0x130] sm:$0xff] %v1166_v8  ;;  %v888_v19 = vadd.f32 %v1584_v49, %v752_v9  ;;  %v952_v20 = vadd.f32 %v1584_v49, %v816_v10  ;;  %v754_v21 = vmul.f32 %v1580_v47, %v451_v17  ;;  %v453_v23 = vpop.f32.mrb[19].mxu0  ;;  %v613_v24 = vpop.f32.mrb[19].mxu1 }
 0x105   :  { %v818_v22 = vmul.f32 %v1580_v47, %v611_v18  ;;  %v1135_v25 = vmax.f32 %v1071_v13, 0.0  ;;  %v1167_v26 = vmax.f32 %v1103_v14, 0.0  ;;  %v889_v27 = vadd.f32 %v1586_v52, %v753_v15 }
 0x106   :  { %v953_v28 = vadd.f32 %v1586_v52, %v817_v16  ;;  %v1008_v29 = vmax.f32 %v888_v19, 0.0  ;;  %v1040_v30 = vmax.f32 %v952_v20, 0.0  ;;  %v890_v31 = vadd.f32 %v1584_v49, %v754_v21 }
 0x107   :  { %v954_v32 = vadd.f32 %v1584_v49, %v818_v22  ;;  %1199 = vst [vmem:[%s2039_s3 + $0x38] sm:$0xff] %v1135_v25  ;;  %1231 = vst [vmem:[%s2039_s3 + $0x138] sm:$0xff] %v1167_v26  ;;  %v755_v33 = vmul.f32 %v1582_v48, %v453_v23  ;;  %v819_v34 = vmul.f32 %v1582_v48, %v613_v24 }
 0x108   :  { %v1072_v35 = vadd.f32 %v1008_v29, %v889_v27  ;;  %v1104_v36 = vadd.f32 %v1040_v30, %v953_v28  ;;  %v1009_v37 = vmax.f32 %v890_v31, 0.0 }
 0x109   :  { %v1041_v38 = vmax.f32 %v954_v32, 0.0  ;;  %v891_v39 = vadd.f32 %v1586_v52, %v755_v33  ;;  %v955_v40 = vadd.f32 %v1586_v52, %v819_v34  ;;  %v457_v41 = vpop.f32.mrb[20].mxu0  ;;  %v617_v42 = vpop.f32.mrb[20].mxu1 }
 0x10a   :  { %v1136_v43 = vmax.f32 %v1072_v35, 0.0  ;;  %v1168_v44 = vmax.f32 %v1104_v36, 0.0  ;;  %v756_v45 = vmul.f32 %v1580_v47, %v457_v41  ;;  %v820_v46 = vmul.f32 %v1580_v47, %v617_v42  ;;  %v459_v50 = vpop.f32.mrb[21].mxu0  ;;  %v619_v51 = vpop.f32.mrb[21].mxu1 }
 0x10b   :  { %v1073_v53 = vadd.f32 %v1009_v37, %v891_v39  ;;  %v1105_v54 = vadd.f32 %v1041_v38, %v955_v40  ;;  %v757_v55 = vmul.f32 %v1582_v48, %v459_v50  ;;  %v821_v56 = vmul.f32 %v1582_v48, %v619_v51  ;;  %v461_v57 = vpop.f32.mrb[22].mxu0  ;;  %v621_v58 = vpop.f32.mrb[22].mxu1 }
 0x10c   :  { %1200 = vst [vmem:[%s2039_s3 + $0x40] sm:$0xff] %v1136_v43  ;;  %1232 = vst [vmem:[%s2039_s3 + $0x140] sm:$0xff] %v1168_v44  ;;  %v892_v59 = vadd.f32 %v1584_v49, %v756_v45  ;;  %v956_v60 = vadd.f32 %v1584_v49, %v820_v46  ;;  %v758_v61 = vmul.f32 %v1580_v47, %v461_v57  ;;  %v463_v63 = vpop.f32.mrb[23].mxu0  ;;  %v623_v0 = vpop.f32.mrb[23].mxu1 }
 0x10d   :  { %v822_v62 = vmul.f32 %v1580_v47, %v621_v58  ;;  %v1137_v1 = vmax.f32 %v1073_v53, 0.0  ;;  %v1169_v2 = vmax.f32 %v1105_v54, 0.0  ;;  %v893_v3 = vadd.f32 %v1586_v52, %v757_v55 }
 0x10e   :  { %v957_v4 = vadd.f32 %v1586_v52, %v821_v56  ;;  %v1010_v5 = vmax.f32 %v892_v59, 0.0  ;;  %v1042_v6 = vmax.f32 %v956_v60, 0.0  ;;  %v894_v7 = vadd.f32 %v1584_v49, %v758_v61 }
 0x10f   :  { %v958_v8 = vadd.f32 %v1584_v49, %v822_v62  ;;  %1201 = vst [vmem:[%s2039_s3 + $0x48] sm:$0xff] %v1137_v1  ;;  %1233 = vst [vmem:[%s2039_s3 + $0x148] sm:$0xff] %v1169_v2  ;;  %v759_v9 = vmul.f32 %v1582_v48, %v463_v63  ;;  %v823_v10 = vmul.f32 %v1582_v48, %v623_v0 }
 0x110   :  { %v1074_v11 = vadd.f32 %v1010_v5, %v893_v3  ;;  %v1106_v12 = vadd.f32 %v1042_v6, %v957_v4  ;;  %v1011_v13 = vmax.f32 %v894_v7, 0.0 }
 0x111   :  { %v1043_v14 = vmax.f32 %v958_v8, 0.0  ;;  %v895_v15 = vadd.f32 %v1586_v52, %v759_v9  ;;  %v959_v16 = vadd.f32 %v1586_v52, %v823_v10  ;;  %v467_v17 = vpop.f32.mrb[24].mxu0  ;;  %v627_v18 = vpop.f32.mrb[24].mxu1 }
 0x112   :  { %v1138_v19 = vmax.f32 %v1074_v11, 0.0  ;;  %v1170_v20 = vmax.f32 %v1106_v12, 0.0  ;;  %v760_v21 = vmul.f32 %v1580_v47, %v467_v17  ;;  %v824_v22 = vmul.f32 %v1580_v47, %v627_v18  ;;  %v469_v23 = vpop.f32.mrb[25].mxu0  ;;  %v629_v24 = vpop.f32.mrb[25].mxu1 }
 0x113   :  { %v1075_v25 = vadd.f32 %v1011_v13, %v895_v15  ;;  %v1107_v26 = vadd.f32 %v1043_v14, %v959_v16  ;;  %v761_v27 = vmul.f32 %v1582_v48, %v469_v23  ;;  %v825_v28 = vmul.f32 %v1582_v48, %v629_v24  ;;  %v471_v29 = vpop.f32.mrb[26].mxu0  ;;  %v631_v30 = vpop.f32.mrb[26].mxu1 }
 0x114   :  { %1202 = vst [vmem:[%s2039_s3 + $0x50] sm:$0xff] %v1138_v19  ;;  %1234 = vst [vmem:[%s2039_s3 + $0x150] sm:$0xff] %v1170_v20  ;;  %v896_v31 = vadd.f32 %v1584_v49, %v760_v21  ;;  %v960_v32 = vadd.f32 %v1584_v49, %v824_v22  ;;  %v762_v33 = vmul.f32 %v1580_v47, %v471_v29  ;;  %v473_v35 = vpop.f32.mrb[27].mxu0  ;;  %v633_v36 = vpop.f32.mrb[27].mxu1 }
 0x115   :  { %v826_v34 = vmul.f32 %v1580_v47, %v631_v30  ;;  %v1139_v37 = vmax.f32 %v1075_v25, 0.0  ;;  %v1171_v38 = vmax.f32 %v1107_v26, 0.0  ;;  %v897_v39 = vadd.f32 %v1586_v52, %v761_v27 }
 0x116   :  { %v961_v40 = vadd.f32 %v1586_v52, %v825_v28  ;;  %v1012_v41 = vmax.f32 %v896_v31, 0.0  ;;  %v1044_v42 = vmax.f32 %v960_v32, 0.0  ;;  %v898_v43 = vadd.f32 %v1584_v49, %v762_v33 }
 0x117   :  { %v962_v44 = vadd.f32 %v1584_v49, %v826_v34  ;;  %1203 = vst [vmem:[%s2039_s3 + $0x58] sm:$0xff] %v1139_v37  ;;  %1235 = vst [vmem:[%s2039_s3 + $0x158] sm:$0xff] %v1171_v38  ;;  %v763_v45 = vmul.f32 %v1582_v48, %v473_v35  ;;  %v827_v46 = vmul.f32 %v1582_v48, %v633_v36 }
 0x118   :  { %v1076_v50 = vadd.f32 %v1012_v41, %v897_v39  ;;  %v1108_v51 = vadd.f32 %v1044_v42, %v961_v40  ;;  %v1013_v53 = vmax.f32 %v898_v43, 0.0 }
 0x119   :  { %v1045_v54 = vmax.f32 %v962_v44, 0.0  ;;  %v899_v55 = vadd.f32 %v1586_v52, %v763_v45  ;;  %v963_v56 = vadd.f32 %v1586_v52, %v827_v46  ;;  %v477_v57 = vpop.f32.mrb[28].mxu0  ;;  %v637_v58 = vpop.f32.mrb[28].mxu1 }
 0x11a   :  { %v1140_v59 = vmax.f32 %v1076_v50, 0.0  ;;  %v1172_v60 = vmax.f32 %v1108_v51, 0.0  ;;  %v764_v61 = vmul.f32 %v1580_v47, %v477_v57  ;;  %v828_v62 = vmul.f32 %v1580_v47, %v637_v58  ;;  %v479_v63 = vpop.f32.mrb[29].mxu0  ;;  %v639_v0 = vpop.f32.mrb[29].mxu1 }
 0x11b   :  { %v1077_v1 = vadd.f32 %v1013_v53, %v899_v55  ;;  %v1109_v2 = vadd.f32 %v1045_v54, %v963_v56  ;;  %v765_v3 = vmul.f32 %v1582_v48, %v479_v63  ;;  %v829_v4 = vmul.f32 %v1582_v48, %v639_v0  ;;  %v481_v5 = vpop.f32.mrb[30].mxu0  ;;  %v641_v6 = vpop.f32.mrb[30].mxu1 }
 0x11c   :  { %1204 = vst [vmem:[%s2039_s3 + $0x60] sm:$0xff] %v1140_v59  ;;  %1236 = vst [vmem:[%s2039_s3 + $0x160] sm:$0xff] %v1172_v60  ;;  %v900_v7 = vadd.f32 %v1584_v49, %v764_v61  ;;  %v964_v8 = vadd.f32 %v1584_v49, %v828_v62  ;;  %v766_v9 = vmul.f32 %v1580_v47, %v481_v5  ;;  %v483_v11 = vpop.f32.mrb[31].mxu0  ;;  %v643_v12 = vpop.f32.mrb[31].mxu1 }
 0x11d   :  { %v830_v10 = vmul.f32 %v1580_v47, %v641_v6  ;;  %v1141_v13 = vmax.f32 %v1077_v1, 0.0  ;;  %v1173_v14 = vmax.f32 %v1109_v2, 0.0  ;;  %v901_v15 = vadd.f32 %v1586_v52, %v765_v3 }
 0x11e   :  { %v965_v16 = vadd.f32 %v1586_v52, %v829_v4  ;;  %v1014_v17 = vmax.f32 %v900_v7, 0.0  ;;  %v1046_v18 = vmax.f32 %v964_v8, 0.0  ;;  %v902_v19 = vadd.f32 %v1584_v49, %v766_v9 }
 0x11f   :  { %v966_v20 = vadd.f32 %v1584_v49, %v830_v10  ;;  %1205 = vst [vmem:[%s2039_s3 + $0x68] sm:$0xff] %v1141_v13  ;;  %1237 = vst [vmem:[%s2039_s3 + $0x168] sm:$0xff] %v1173_v14  ;;  %v767_v21 = vmul.f32 %v1582_v48, %v483_v11  ;;  %v831_v22 = vmul.f32 %v1582_v48, %v643_v12 }
 0x120   :  { %v1078_v23 = vadd.f32 %v1014_v17, %v901_v15  ;;  %v1110_v24 = vadd.f32 %v1046_v18, %v965_v16  ;;  %v1015_v25 = vmax.f32 %v902_v19, 0.0 }
 0x121   :  { %v1047_v26 = vmax.f32 %v966_v20, 0.0  ;;  %v903_v27 = vadd.f32 %v1586_v52, %v767_v21  ;;  %v967_v28 = vadd.f32 %v1586_v52, %v831_v22  ;;  %v487_v29 = vpop.f32.mrb[32].mxu0  ;;  %v647_v30 = vpop.f32.mrb[32].mxu1 }
 0x122   :  { %v1142_v31 = vmax.f32 %v1078_v23, 0.0  ;;  %v1174_v32 = vmax.f32 %v1110_v24, 0.0  ;;  %v768_v33 = vmul.f32 %v1580_v47, %v487_v29  ;;  %v832_v34 = vmul.f32 %v1580_v47, %v647_v30  ;;  %v489_v35 = vpop.f32.mrb[33].mxu0  ;;  %v649_v36 = vpop.f32.mrb[33].mxu1 }
 0x123   :  { %v1079_v37 = vadd.f32 %v1015_v25, %v903_v27  ;;  %v1111_v38 = vadd.f32 %v1047_v26, %v967_v28  ;;  %v769_v39 = vmul.f32 %v1582_v48, %v489_v35  ;;  %v833_v40 = vmul.f32 %v1582_v48, %v649_v36  ;;  %v491_v41 = vpop.f32.mrb[34].mxu0  ;;  %v651_v42 = vpop.f32.mrb[34].mxu1 }
 0x124   :  { %1206 = vst [vmem:[%s2039_s3 + $0x70] sm:$0xff] %v1142_v31  ;;  %1238 = vst [vmem:[%s2039_s3 + $0x170] sm:$0xff] %v1174_v32  ;;  %v904_v43 = vadd.f32 %v1584_v49, %v768_v33  ;;  %v968_v44 = vadd.f32 %v1584_v49, %v832_v34  ;;  %v770_v45 = vmul.f32 %v1580_v47, %v491_v41  ;;  %v493_v50 = vpop.f32.mrb[35].mxu0  ;;  %v653_v51 = vpop.f32.mrb[35].mxu1 }
 0x125   :  { %v834_v46 = vmul.f32 %v1580_v47, %v651_v42  ;;  %v1143_v53 = vmax.f32 %v1079_v37, 0.0  ;;  %v1175_v54 = vmax.f32 %v1111_v38, 0.0  ;;  %v905_v55 = vadd.f32 %v1586_v52, %v769_v39 }
 0x126   :  { %v969_v56 = vadd.f32 %v1586_v52, %v833_v40  ;;  %v1016_v57 = vmax.f32 %v904_v43, 0.0  ;;  %v1048_v58 = vmax.f32 %v968_v44, 0.0  ;;  %v906_v59 = vadd.f32 %v1584_v49, %v770_v45 }
 0x127   :  { %v970_v60 = vadd.f32 %v1584_v49, %v834_v46  ;;  %1207 = vst [vmem:[%s2039_s3 + $0x78] sm:$0xff] %v1143_v53  ;;  %1239 = vst [vmem:[%s2039_s3 + $0x178] sm:$0xff] %v1175_v54  ;;  %v771_v61 = vmul.f32 %v1582_v48, %v493_v50  ;;  %v835_v62 = vmul.f32 %v1582_v48, %v653_v51 }
 0x128   :  { %v1080_v63 = vadd.f32 %v1016_v57, %v905_v55  ;;  %v1112_v0 = vadd.f32 %v1048_v58, %v969_v56  ;;  %v1017_v1 = vmax.f32 %v906_v59, 0.0 }
 0x129   :  { %v1049_v2 = vmax.f32 %v970_v60, 0.0  ;;  %v907_v3 = vadd.f32 %v1586_v52, %v771_v61  ;;  %v971_v4 = vadd.f32 %v1586_v52, %v835_v62  ;;  %v497_v5 = vpop.f32.mrb[36].mxu0  ;;  %v657_v6 = vpop.f32.mrb[36].mxu1 }
 0x12a   :  { %v1144_v7 = vmax.f32 %v1080_v63, 0.0  ;;  %v1176_v8 = vmax.f32 %v1112_v0, 0.0  ;;  %v772_v9 = vmul.f32 %v1580_v47, %v497_v5  ;;  %v836_v10 = vmul.f32 %v1580_v47, %v657_v6  ;;  %v499_v11 = vpop.f32.mrb[37].mxu0  ;;  %v659_v12 = vpop.f32.mrb[37].mxu1 }
 0x12b   :  { %v1081_v13 = vadd.f32 %v1017_v1, %v907_v3  ;;  %v1113_v14 = vadd.f32 %v1049_v2, %v971_v4  ;;  %v773_v15 = vmul.f32 %v1582_v48, %v499_v11  ;;  %v837_v16 = vmul.f32 %v1582_v48, %v659_v12  ;;  %v501_v17 = vpop.f32.mrb[38].mxu0  ;;  %v661_v18 = vpop.f32.mrb[38].mxu1 }
 0x12c   :  { %1208 = vst [vmem:[%s2039_s3 + $0x80] sm:$0xff] %v1144_v7  ;;  %1240 = vst [vmem:[%s2039_s3 + $0x180] sm:$0xff] %v1176_v8  ;;  %v908_v19 = vadd.f32 %v1584_v49, %v772_v9  ;;  %v972_v20 = vadd.f32 %v1584_v49, %v836_v10  ;;  %v774_v21 = vmul.f32 %v1580_v47, %v501_v17  ;;  %v503_v23 = vpop.f32.mrb[39].mxu0  ;;  %v663_v24 = vpop.f32.mrb[39].mxu1 }
 0x12d   :  { %v838_v22 = vmul.f32 %v1580_v47, %v661_v18  ;;  %v1145_v25 = vmax.f32 %v1081_v13, 0.0  ;;  %v1177_v26 = vmax.f32 %v1113_v14, 0.0  ;;  %v909_v27 = vadd.f32 %v1586_v52, %v773_v15 }
 0x12e   :  { %v973_v28 = vadd.f32 %v1586_v52, %v837_v16  ;;  %v1018_v29 = vmax.f32 %v908_v19, 0.0  ;;  %v1050_v30 = vmax.f32 %v972_v20, 0.0  ;;  %v910_v31 = vadd.f32 %v1584_v49, %v774_v21 }
 0x12f   :  { %v974_v32 = vadd.f32 %v1584_v49, %v838_v22  ;;  %1209 = vst [vmem:[%s2039_s3 + $0x88] sm:$0xff] %v1145_v25  ;;  %1241 = vst [vmem:[%s2039_s3 + $0x188] sm:$0xff] %v1177_v26  ;;  %v775_v33 = vmul.f32 %v1582_v48, %v503_v23  ;;  %v839_v34 = vmul.f32 %v1582_v48, %v663_v24 }
 0x130   :  { %v1082_v35 = vadd.f32 %v1018_v29, %v909_v27  ;;  %v1114_v36 = vadd.f32 %v1050_v30, %v973_v28  ;;  %v1019_v37 = vmax.f32 %v910_v31, 0.0 }
 0x131   :  { %v1051_v38 = vmax.f32 %v974_v32, 0.0  ;;  %v911_v39 = vadd.f32 %v1586_v52, %v775_v33  ;;  %v975_v40 = vadd.f32 %v1586_v52, %v839_v34  ;;  %v507_v41 = vpop.f32.mrb[40].mxu0  ;;  %v667_v42 = vpop.f32.mrb[40].mxu1 }
 0x132   :  { %v1146_v43 = vmax.f32 %v1082_v35, 0.0  ;;  %v1178_v44 = vmax.f32 %v1114_v36, 0.0  ;;  %v776_v45 = vmul.f32 %v1580_v47, %v507_v41  ;;  %v840_v46 = vmul.f32 %v1580_v47, %v667_v42  ;;  %v509_v50 = vpop.f32.mrb[41].mxu0  ;;  %v669_v51 = vpop.f32.mrb[41].mxu1 }
 0x133   :  { %v1083_v53 = vadd.f32 %v1019_v37, %v911_v39  ;;  %v1115_v54 = vadd.f32 %v1051_v38, %v975_v40  ;;  %v777_v55 = vmul.f32 %v1582_v48, %v509_v50  ;;  %v841_v56 = vmul.f32 %v1582_v48, %v669_v51  ;;  %v511_v57 = vpop.f32.mrb[42].mxu0  ;;  %v671_v58 = vpop.f32.mrb[42].mxu1 }
 0x134   :  { %1210 = vst [vmem:[%s2039_s3 + $0x90] sm:$0xff] %v1146_v43  ;;  %1242 = vst [vmem:[%s2039_s3 + $0x190] sm:$0xff] %v1178_v44  ;;  %v912_v59 = vadd.f32 %v1584_v49, %v776_v45  ;;  %v976_v60 = vadd.f32 %v1584_v49, %v840_v46  ;;  %v778_v61 = vmul.f32 %v1580_v47, %v511_v57  ;;  %v513_v63 = vpop.f32.mrb[43].mxu0  ;;  %v673_v0 = vpop.f32.mrb[43].mxu1 }
 0x135   :  { %v842_v62 = vmul.f32 %v1580_v47, %v671_v58  ;;  %v1147_v1 = vmax.f32 %v1083_v53, 0.0  ;;  %v1179_v2 = vmax.f32 %v1115_v54, 0.0  ;;  %v913_v3 = vadd.f32 %v1586_v52, %v777_v55 }
 0x136   :  { %v977_v4 = vadd.f32 %v1586_v52, %v841_v56  ;;  %v1020_v5 = vmax.f32 %v912_v59, 0.0  ;;  %v1052_v6 = vmax.f32 %v976_v60, 0.0  ;;  %v914_v7 = vadd.f32 %v1584_v49, %v778_v61 }
 0x137   :  { %v978_v8 = vadd.f32 %v1584_v49, %v842_v62  ;;  %1211 = vst [vmem:[%s2039_s3 + $0x98] sm:$0xff] %v1147_v1  ;;  %1243 = vst [vmem:[%s2039_s3 + $0x198] sm:$0xff] %v1179_v2  ;;  %v779_v9 = vmul.f32 %v1582_v48, %v513_v63  ;;  %v843_v10 = vmul.f32 %v1582_v48, %v673_v0 }
 0x138   :  { %v1084_v11 = vadd.f32 %v1020_v5, %v913_v3  ;;  %v1116_v12 = vadd.f32 %v1052_v6, %v977_v4  ;;  %v1021_v13 = vmax.f32 %v914_v7, 0.0 }
 0x139   :  { %v1053_v14 = vmax.f32 %v978_v8, 0.0  ;;  %v915_v15 = vadd.f32 %v1586_v52, %v779_v9  ;;  %v979_v16 = vadd.f32 %v1586_v52, %v843_v10  ;;  %v517_v17 = vpop.f32.mrb[44].mxu0  ;;  %v677_v18 = vpop.f32.mrb[44].mxu1 }
 0x13a   :  { %v1148_v19 = vmax.f32 %v1084_v11, 0.0  ;;  %v1180_v20 = vmax.f32 %v1116_v12, 0.0  ;;  %v780_v21 = vmul.f32 %v1580_v47, %v517_v17  ;;  %v844_v22 = vmul.f32 %v1580_v47, %v677_v18  ;;  %v519_v23 = vpop.f32.mrb[45].mxu0  ;;  %v679_v24 = vpop.f32.mrb[45].mxu1 }
 0x13b   :  { %v1085_v25 = vadd.f32 %v1021_v13, %v915_v15  ;;  %v1117_v26 = vadd.f32 %v1053_v14, %v979_v16  ;;  %v781_v27 = vmul.f32 %v1582_v48, %v519_v23  ;;  %v845_v28 = vmul.f32 %v1582_v48, %v679_v24  ;;  %v521_v29 = vpop.f32.mrb[46].mxu0  ;;  %v681_v30 = vpop.f32.mrb[46].mxu1 }
 0x13c   :  { %1212 = vst [vmem:[%s2039_s3 + $0xa0] sm:$0xff] %v1148_v19  ;;  %1244 = vst [vmem:[%s2039_s3 + $0x1a0] sm:$0xff] %v1180_v20  ;;  %v916_v31 = vadd.f32 %v1584_v49, %v780_v21  ;;  %v980_v32 = vadd.f32 %v1584_v49, %v844_v22  ;;  %v782_v33 = vmul.f32 %v1580_v47, %v521_v29  ;;  %v523_v35 = vpop.f32.mrb[47].mxu0  ;;  %v683_v36 = vpop.f32.mrb[47].mxu1 }
 0x13d   :  { %v846_v34 = vmul.f32 %v1580_v47, %v681_v30  ;;  %v1149_v37 = vmax.f32 %v1085_v25, 0.0  ;;  %v1181_v38 = vmax.f32 %v1117_v26, 0.0  ;;  %v917_v39 = vadd.f32 %v1586_v52, %v781_v27 }
 0x13e   :  { %v981_v40 = vadd.f32 %v1586_v52, %v845_v28  ;;  %v1022_v41 = vmax.f32 %v916_v31, 0.0  ;;  %v1054_v42 = vmax.f32 %v980_v32, 0.0  ;;  %v918_v43 = vadd.f32 %v1584_v49, %v782_v33 }
 0x13f   :  { %v982_v44 = vadd.f32 %v1584_v49, %v846_v34  ;;  %1213 = vst [vmem:[%s2039_s3 + $0xa8] sm:$0xff] %v1149_v37  ;;  %1245 = vst [vmem:[%s2039_s3 + $0x1a8] sm:$0xff] %v1181_v38  ;;  %v783_v45 = vmul.f32 %v1582_v48, %v523_v35  ;;  %v847_v46 = vmul.f32 %v1582_v48, %v683_v36 }
 0x140   :  { %v1086_v50 = vadd.f32 %v1022_v41, %v917_v39  ;;  %v1118_v51 = vadd.f32 %v1054_v42, %v981_v40  ;;  %v1023_v53 = vmax.f32 %v918_v43, 0.0 }
 0x141   :  { %v1055_v54 = vmax.f32 %v982_v44, 0.0  ;;  %v919_v55 = vadd.f32 %v1586_v52, %v783_v45  ;;  %v983_v56 = vadd.f32 %v1586_v52, %v847_v46  ;;  %v527_v57 = vpop.f32.mrb[48].mxu0  ;;  %v687_v58 = vpop.f32.mrb[48].mxu1 }
 0x142   :  { %v1150_v59 = vmax.f32 %v1086_v50, 0.0  ;;  %v1182_v60 = vmax.f32 %v1118_v51, 0.0  ;;  %v784_v61 = vmul.f32 %v1580_v47, %v527_v57  ;;  %v848_v62 = vmul.f32 %v1580_v47, %v687_v58  ;;  %v529_v63 = vpop.f32.mrb[49].mxu0  ;;  %v689_v0 = vpop.f32.mrb[49].mxu1 }
 0x143   :  { %v1087_v1 = vadd.f32 %v1023_v53, %v919_v55  ;;  %v1119_v2 = vadd.f32 %v1055_v54, %v983_v56  ;;  %v785_v3 = vmul.f32 %v1582_v48, %v529_v63  ;;  %v849_v4 = vmul.f32 %v1582_v48, %v689_v0  ;;  %v531_v5 = vpop.f32.mrb[50].mxu0  ;;  %v691_v6 = vpop.f32.mrb[50].mxu1 }
 0x144   :  { %1214 = vst [vmem:[%s2039_s3 + $0xb0] sm:$0xff] %v1150_v59  ;;  %1246 = vst [vmem:[%s2039_s3 + $0x1b0] sm:$0xff] %v1182_v60  ;;  %v920_v7 = vadd.f32 %v1584_v49, %v784_v61  ;;  %v984_v8 = vadd.f32 %v1584_v49, %v848_v62  ;;  %v786_v9 = vmul.f32 %v1580_v47, %v531_v5  ;;  %v533_v11 = vpop.f32.mrb[51].mxu0  ;;  %v693_v12 = vpop.f32.mrb[51].mxu1 }
 0x145   :  { %v850_v10 = vmul.f32 %v1580_v47, %v691_v6  ;;  %v1151_v13 = vmax.f32 %v1087_v1, 0.0  ;;  %v1183_v14 = vmax.f32 %v1119_v2, 0.0  ;;  %v921_v15 = vadd.f32 %v1586_v52, %v785_v3 }
 0x146   :  { %v985_v16 = vadd.f32 %v1586_v52, %v849_v4  ;;  %v1024_v17 = vmax.f32 %v920_v7, 0.0  ;;  %v1056_v18 = vmax.f32 %v984_v8, 0.0  ;;  %v922_v19 = vadd.f32 %v1584_v49, %v786_v9 }
 0x147   :  { %v986_v20 = vadd.f32 %v1584_v49, %v850_v10  ;;  %1215 = vst [vmem:[%s2039_s3 + $0xb8] sm:$0xff] %v1151_v13  ;;  %1247 = vst [vmem:[%s2039_s3 + $0x1b8] sm:$0xff] %v1183_v14  ;;  %v787_v21 = vmul.f32 %v1582_v48, %v533_v11  ;;  %v851_v22 = vmul.f32 %v1582_v48, %v693_v12 }
 0x148   :  { %v1088_v23 = vadd.f32 %v1024_v17, %v921_v15  ;;  %v1120_v24 = vadd.f32 %v1056_v18, %v985_v16  ;;  %v1025_v25 = vmax.f32 %v922_v19, 0.0 }
 0x149   :  { %v1057_v26 = vmax.f32 %v986_v20, 0.0  ;;  %v923_v27 = vadd.f32 %v1586_v52, %v787_v21  ;;  %v987_v28 = vadd.f32 %v1586_v52, %v851_v22  ;;  %v537_v29 = vpop.f32.mrb[52].mxu0  ;;  %v697_v30 = vpop.f32.mrb[52].mxu1 }
 0x14a   :  { %v1152_v31 = vmax.f32 %v1088_v23, 0.0  ;;  %v1184_v32 = vmax.f32 %v1120_v24, 0.0  ;;  %v788_v33 = vmul.f32 %v1580_v47, %v537_v29  ;;  %v852_v34 = vmul.f32 %v1580_v47, %v697_v30  ;;  %v539_v35 = vpop.f32.mrb[53].mxu0  ;;  %v699_v36 = vpop.f32.mrb[53].mxu1 }
 0x14b   :  { %v1089_v37 = vadd.f32 %v1025_v25, %v923_v27  ;;  %v1121_v38 = vadd.f32 %v1057_v26, %v987_v28  ;;  %v789_v39 = vmul.f32 %v1582_v48, %v539_v35  ;;  %v853_v40 = vmul.f32 %v1582_v48, %v699_v36  ;;  %v541_v41 = vpop.f32.mrb[54].mxu0  ;;  %v701_v42 = vpop.f32.mrb[54].mxu1 }
 0x14c   :  { %1216 = vst [vmem:[%s2039_s3 + $0xc0] sm:$0xff] %v1152_v31  ;;  %1248 = vst [vmem:[%s2039_s3 + $0x1c0] sm:$0xff] %v1184_v32  ;;  %v924_v43 = vadd.f32 %v1584_v49, %v788_v33  ;;  %v988_v44 = vadd.f32 %v1584_v49, %v852_v34  ;;  %v790_v45 = vmul.f32 %v1580_v47, %v541_v41  ;;  %v543_v50 = vpop.f32.mrb[55].mxu0  ;;  %v703_v51 = vpop.f32.mrb[55].mxu1 }
 0x14d   :  { %v854_v46 = vmul.f32 %v1580_v47, %v701_v42  ;;  %v1153_v53 = vmax.f32 %v1089_v37, 0.0  ;;  %v1185_v54 = vmax.f32 %v1121_v38, 0.0  ;;  %v925_v55 = vadd.f32 %v1586_v52, %v789_v39 }
 0x14e   :  { %v989_v56 = vadd.f32 %v1586_v52, %v853_v40  ;;  %v1026_v57 = vmax.f32 %v924_v43, 0.0  ;;  %v1058_v58 = vmax.f32 %v988_v44, 0.0  ;;  %v926_v59 = vadd.f32 %v1584_v49, %v790_v45 }
 0x14f   :  { %v990_v60 = vadd.f32 %v1584_v49, %v854_v46  ;;  %1217 = vst [vmem:[%s2039_s3 + $0xc8] sm:$0xff] %v1153_v53  ;;  %1249 = vst [vmem:[%s2039_s3 + $0x1c8] sm:$0xff] %v1185_v54  ;;  %v791_v61 = vmul.f32 %v1582_v48, %v543_v50  ;;  %v855_v62 = vmul.f32 %v1582_v48, %v703_v51 }
 0x150   :  { %v1090_v63 = vadd.f32 %v1026_v57, %v925_v55  ;;  %v1122_v0 = vadd.f32 %v1058_v58, %v989_v56  ;;  %v1027_v1 = vmax.f32 %v926_v59, 0.0 }
 0x151   :  { %v1059_v2 = vmax.f32 %v990_v60, 0.0  ;;  %v927_v3 = vadd.f32 %v1586_v52, %v791_v61  ;;  %v991_v4 = vadd.f32 %v1586_v52, %v855_v62  ;;  %v547_v5 = vpop.f32.mrb[56].mxu0  ;;  %v707_v6 = vpop.f32.mrb[56].mxu1 }
 0x152   :  { %v1154_v7 = vmax.f32 %v1090_v63, 0.0  ;;  %v1186_v8 = vmax.f32 %v1122_v0, 0.0  ;;  %v792_v9 = vmul.f32 %v1580_v47, %v547_v5  ;;  %v856_v10 = vmul.f32 %v1580_v47, %v707_v6  ;;  %v549_v11 = vpop.f32.mrb[57].mxu0  ;;  %v709_v12 = vpop.f32.mrb[57].mxu1 }
 0x153   :  { %v1091_v13 = vadd.f32 %v1027_v1, %v927_v3  ;;  %v1123_v14 = vadd.f32 %v1059_v2, %v991_v4  ;;  %v793_v15 = vmul.f32 %v1582_v48, %v549_v11  ;;  %v857_v16 = vmul.f32 %v1582_v48, %v709_v12  ;;  %v551_v17 = vpop.f32.mrb[58].mxu0  ;;  %v711_v18 = vpop.f32.mrb[58].mxu1 }
 0x154   :  { %1218 = vst [vmem:[%s2039_s3 + $0xd0] sm:$0xff] %v1154_v7  ;;  %1250 = vst [vmem:[%s2039_s3 + $0x1d0] sm:$0xff] %v1186_v8  ;;  %v928_v19 = vadd.f32 %v1584_v49, %v792_v9  ;;  %v992_v20 = vadd.f32 %v1584_v49, %v856_v10  ;;  %v794_v21 = vmul.f32 %v1580_v47, %v551_v17  ;;  %v553_v23 = vpop.f32.mrb[59].mxu0  ;;  %v713_v24 = vpop.f32.mrb[59].mxu1 }
 0x155   :  { %v858_v22 = vmul.f32 %v1580_v47, %v711_v18  ;;  %v1155_v25 = vmax.f32 %v1091_v13, 0.0  ;;  %v1187_v26 = vmax.f32 %v1123_v14, 0.0  ;;  %v929_v27 = vadd.f32 %v1586_v52, %v793_v15 }
 0x156   :  { %v993_v28 = vadd.f32 %v1586_v52, %v857_v16  ;;  %v1028_v29 = vmax.f32 %v928_v19, 0.0  ;;  %v1060_v30 = vmax.f32 %v992_v20, 0.0  ;;  %v930_v31 = vadd.f32 %v1584_v49, %v794_v21 }
 0x157   :  { %v994_v32 = vadd.f32 %v1584_v49, %v858_v22  ;;  %1219 = vst [vmem:[%s2039_s3 + $0xd8] sm:$0xff] %v1155_v25  ;;  %1251 = vst [vmem:[%s2039_s3 + $0x1d8] sm:$0xff] %v1187_v26  ;;  %v795_v33 = vmul.f32 %v1582_v48, %v553_v23  ;;  %v859_v34 = vmul.f32 %v1582_v48, %v713_v24 }
 0x158   :  { %v1092_v35 = vadd.f32 %v1028_v29, %v929_v27  ;;  %v1124_v36 = vadd.f32 %v1060_v30, %v993_v28  ;;  %v1029_v37 = vmax.f32 %v930_v31, 0.0 }
 0x159   :  { %v1061_v38 = vmax.f32 %v994_v32, 0.0  ;;  %v931_v39 = vadd.f32 %v1586_v52, %v795_v33  ;;  %v995_v40 = vadd.f32 %v1586_v52, %v859_v34  ;;  %v557_v41 = vpop.f32.mrb[60].mxu0  ;;  %v717_v42 = vpop.f32.mrb[60].mxu1 }
 0x15a   :  { %v1156_v43 = vmax.f32 %v1092_v35, 0.0  ;;  %v1188_v44 = vmax.f32 %v1124_v36, 0.0  ;;  %v796_v45 = vmul.f32 %v1580_v47, %v557_v41  ;;  %v860_v46 = vmul.f32 %v1580_v47, %v717_v42  ;;  %v559_v50 = vpop.f32.mrb[61].mxu0  ;;  %v719_v51 = vpop.f32.mrb[61].mxu1 }
 0x15b   :  { %v1093_v53 = vadd.f32 %v1029_v37, %v931_v39  ;;  %v1125_v54 = vadd.f32 %v1061_v38, %v995_v40  ;;  %v797_v55 = vmul.f32 %v1582_v48, %v559_v50  ;;  %v861_v56 = vmul.f32 %v1582_v48, %v719_v51  ;;  %v561_v57 = vpop.f32.mrb[62].mxu0  ;;  %v721_v58 = vpop.f32.mrb[62].mxu1 }
 0x15c   :  { %1220 = vst [vmem:[%s2039_s3 + $0xe0] sm:$0xff] %v1156_v43  ;;  %1252 = vst [vmem:[%s2039_s3 + $0x1e0] sm:$0xff] %v1188_v44  ;;  %v932_v59 = vadd.f32 %v1584_v49, %v796_v45  ;;  %v996_v60 = vadd.f32 %v1584_v49, %v860_v46  ;;  %v798_v61 = vmul.f32 %v1580_v47, %v561_v57  ;;  %v563_v63 = vpop.f32.mrb[63].mxu0  ;;  %v723_v0 = vpop.f32.mrb[63].mxu1 }
 0x15d   :  { %v862_v62 = vmul.f32 %v1580_v47, %v721_v58  ;;  %v1157_v1 = vmax.f32 %v1093_v53, 0.0  ;;  %v1189_v2 = vmax.f32 %v1125_v54, 0.0  ;;  %v933_v3 = vadd.f32 %v1586_v52, %v797_v55 }
 0x15e   :  { %v997_v4 = vadd.f32 %v1586_v52, %v861_v56  ;;  %v1030_v5 = vmax.f32 %v932_v59, 0.0  ;;  %v1062_v6 = vmax.f32 %v996_v60, 0.0  ;;  %v934_v7 = vadd.f32 %v1584_v49, %v798_v61 }
 0x15f   :  { %v998_v8 = vadd.f32 %v1584_v49, %v862_v62  ;;  %1221 = vst [vmem:[%s2039_s3 + $0xe8] sm:$0xff] %v1157_v1  ;;  %1253 = vst [vmem:[%s2039_s3 + $0x1e8] sm:$0xff] %v1189_v2  ;;  %v799_v47 = vmul.f32 %v1582_v48, %v563_v63  ;;  %v863_v9 = vmul.f32 %v1582_v48, %v723_v0 }
 0x160   :  { %v1094_v10 = vadd.f32 %v1030_v5, %v933_v3  ;;  %v1126_v11 = vadd.f32 %v1062_v6, %v997_v4  ;;  %v1031_v12 = vmax.f32 %v934_v7, 0.0 }
 0x161   :  { %v1063_v13 = vmax.f32 %v998_v8, 0.0  ;;  %v935_v14 = vadd.f32 %v1586_v52, %v799_v47  ;;  %v999_v49 = vadd.f32 %v1586_v52, %v863_v9 }
 0x162   :  { %v1158_v15 = vmax.f32 %v1094_v10, 0.0  ;;  %v1190_v16 = vmax.f32 %v1126_v11, 0.0 }
 0x163   :  { %v1095_v17 = vadd.f32 %v1031_v12, %v935_v14  ;;  %v1127_v18 = vadd.f32 %v1063_v13, %v999_v49 }
 0x164   :  { %1222 = vst [vmem:[%s2039_s3 + $0xf0] sm:$0xff] %v1158_v15  ;;  %1254 = vst [vmem:[%s2039_s3 + $0x1f0] sm:$0xff] %v1190_v16 }
 0x165   :  { %v1159_v48 = vmax.f32 %v1095_v17, 0.0  ;;  %v1191_v19 = vmax.f32 %v1127_v18, 0.0 }
 0x167   :  { %1223 = vst [vmem:[%s2039_s3 + $0xf8] sm:$0xff] %v1159_v48  ;;  %1255 = vst [vmem:[%s2039_s3 + $0x1f8] sm:$0xff] %v1191_v19 }

</bundles_post_ra>
